<compile_context>
chip_gen: v7x
topology: tpu7x:2x2x1
jax: 0.10.0
libtpu: 0.0.40
codegen_flags: <defaults>
</compile_context>

<pallas_src>
import functools

import jax
import jax.numpy as jnp
import numpy as np
from jax.experimental import pallas as pl
from jax.experimental.pallas import tpu as pltpu

# ---------------- module hyper-parameters (small, consistent with the module) ----------
VOCAB = 100
EMB_DIM = 16          # embedding_dim
HIDDEN = 50           # hidden_dim (must equal 50 * L2 for fc to be well-formed)
C2_OUT = 50           # cnn2 out channels (fixed by the module)
K1, S1 = 10, 5        # cnn  kernel / stride
K2, S2 = 10, 7        # cnn2 kernel / stride
BATCH = 2
SEQ = 60              # -> L1 = 11, L2 = 1, flatten dim = 50 == HIDDEN
NUM_CLASSES = 2

LANE = 128            # TPU lane width: all channel-ish dims are zero-padded to this
HP = 128              # padded conv1-output channels (H=50 -> 128)
C2P = 128             # padded conv2-output channels (50 -> 128)
OUT_PAD = 128         # padded fc output width (true output dim = NUM_CLASSES)


def _round_up(x, m):
    return (x + m - 1) // m * m


def _make_kernel(BB, L1, L2, G1, cdtype):
    """Kernel: conv1 (G1 aligned slab matmuls) -> conv2 (K2 per-tap matmuls) -> fc."""

    def kernel(x_ref, w1g_ref, b1_ref, w2_ref, b2_ref, wfc_ref, bfc_ref, out_ref):
        # x_ref: (G*BB, 128) in cdtype, group-major / batch-minor: row j*BB + b holds the
        # zero-padded x_emb[b, j*S1:(j+1)*S1, :] slice (S1*E = 80 real lanes of 128).
        # conv1: window t uses groups t .. t+G1-1, so each group-weight is one matmul over
        # an aligned, contiguous row slab; result row = t*BB + b.
        h = None
        for g in range(G1):
            d = jnp.dot(x_ref[g * BB:(g + L1) * BB, :], w1g_ref[g],
                        preferred_element_type=jnp.float32)
            h = d if h is None else h + d
        h1 = jnp.maximum(h + b1_ref[...], 0.0)            # (L1*BB, HP) f32; bias+ReLU once
        h1c = h1.astype(cdtype)                           # MXU operands in cdtype, f32 accum

        acc_fc = jnp.zeros((BB, OUT_PAD), jnp.float32)
        for t2 in range(L2):                              # L2 == 1 for a well-formed module
            acc2 = jnp.zeros((BB, C2P), jnp.float32)
            for k in range(K2):                           # conv2 taps: aligned (BB,128) slabs
                r0 = (t2 * S2 + k) * BB
                acc2 += jnp.dot(h1c[r0:r0 + BB, :], w2_ref[k],
                                preferred_element_type=jnp.float32)
            o2 = jnp.maximum(acc2 + b2_ref[...], 0.0).astype(cdtype)
            # fc contribution of this conv2 position (PyTorch .view(B,-1) is channel-major;
            # wfc was re-ordered in the wrapper so position t2 owns a contiguous 128-row block)
            acc_fc += jnp.dot(o2, wfc_ref[t2 * C2P:(t2 + 1) * C2P, :],
                              preferred_element_type=jnp.float32)
        out_ref[...] = acc_fc + bfc_ref[...]              # lane-dense (BB,128) f32 store

    return kernel


@functools.partial(jax.jit, static_argnames=("use_bf16", "batch_block"))
def imdbcnn_pallas(x_emb, w1, b1, w2, b2, wfc, bfc, *, use_bf16=True, batch_block=256):
    """x_emb: (B, L, E) float32 embedded tokens.  Weights in PyTorch layout."""
    B, L, E = x_emb.shape
    H = w1.shape[0]
    C2 = w2.shape[0]
    assert w1.shape == (H, E, K1) and w2.shape == (C2, H, K2)
    assert K1 % S1 == 0, "conv1 group decomposition needs stride | kernel (true here: 10/5)"
    G1 = K1 // S1                                   # groups per conv1 window (= 2)
    L1 = (L - K1) // S1 + 1
    L2 = (L1 - K2) // S2 + 1
    assert L1 >= 1 and L2 >= 1
    assert wfc.shape[1] == C2 * L2, "fc input dim must equal 50*L2 (module constraint)"
    n_cls = wfc.shape[0]
    G = L1 + G1 - 1                                 # stride groups actually read (= 12)
    W_G = S1 * E                                    # real lanes per group (= 80)

    cdtype = jnp.bfloat16 if use_bf16 else jnp.float32

    # ---- batch blocking: BB multiple of 16 so every block is (8,128)/(16,128)-aligned ----
    # Default BB=256 -> BB*L1 = 2816 matmul rows per grid step (v6e MXU guidance M >= 512);
    # production batches >= 2*BB give nb >= 2 so the "parallel" axis engages both v7x TCs.
    BB = _round_up(max(1, min(batch_block, _round_up(B, 16))), 16)
    nb = pl.cdiv(B, BB)
    Bp = nb * BB

    # ---- activation prep (plain-JAX glue): bf16 cast + grouping + lane pad + transpose ----
    # No K1/S1-duplicated im2col is materialized; the only HBM intermediate is this
    # non-duplicated (nb*G*BB, 128) bf16 slab, read exactly once by the kernel.
    # TODO(synk): fuse the embedding gather + this grouping into the kernel
    # (PrefetchScalarGridSpec token ids + manual DMA gather) to remove this wrapper pass too.
    xs = x_emb[:, :G * S1, :].astype(cdtype).reshape(B, G, W_G)
    xs = jnp.pad(xs, ((0, Bp - B), (0, 0), (0, LANE - W_G)))          # (Bp, G, 128)
    x2 = jnp.transpose(xs.reshape(nb, BB, G, LANE), (0, 2, 1, 3))     # (nb, G, BB, 128)
    x2 = x2.reshape(nb * G * BB, LANE)               # row (i*G + j)*BB + b, group-major

    # ---- weight reshapes / zero-padding to 128 lanes (glue, plain JAX) ----
    # conv1 group weights: w1g[g, r*E+e, h] = w1[h, e, g*S1+r]; pad rows 80->128, cols H->128
    w1g = jnp.transpose(w1, (2, 1, 0)).reshape(G1, W_G, H)
    w1g = jnp.pad(w1g, ((0, 0), (0, LANE - W_G), (0, HP - H))).astype(cdtype)
    b1p = jnp.pad(b1.astype(jnp.float32), (0, HP - H)).reshape(1, HP)
    # conv2 per-tap weights: w2k[k, h, c] = w2[c, h, k]; pad H->128 rows, C2->128 cols
    w2k = jnp.transpose(w2, (2, 1, 0))
    w2k = jnp.pad(w2k, ((0, 0), (0, HP - H), (0, C2P - C2))).astype(cdtype)
    b2p = jnp.pad(b2.astype(jnp.float32), (0, C2P - C2)).reshape(1, C2P)
    # fc: PyTorch flatten of (B, C2, L2) is channel-major (col = c*L2 + t2); regroup so that
    # conv2 position t2 owns rows [t2*C2P, t2*C2P + C2) of the padded fc weight.
    wfc_r = jnp.transpose(wfc.reshape(n_cls, C2, L2), (2, 1, 0))      # (L2, C2, n_cls)
    wfc_pad = jnp.pad(wfc_r, ((0, 0), (0, C2P - C2), (0, OUT_PAD - n_cls)))
    wfc_pad = wfc_pad.reshape(L2 * C2P, OUT_PAD).astype(cdtype)
    bfc_pad = jnp.pad(bfc.astype(jnp.float32), (0, OUT_PAD - n_cls)).reshape(1, OUT_PAD)

    kernel = _make_kernel(BB, L1, L2, G1, cdtype)

    out = pl.pallas_call(
        kernel,
        out_shape=jax.ShapeDtypeStruct((Bp, OUT_PAD), jnp.float32),
        grid=(nb,),
        in_specs=[
            pl.BlockSpec((G * BB, LANE), lambda i: (i, 0)),     # per-block activation slab
            pl.BlockSpec((G1, LANE, HP), lambda i: (0, 0, 0)),  # weights: constant index ->
            pl.BlockSpec((1, HP), lambda i: (0, 0)),            #   blocks stay VMEM-resident
            pl.BlockSpec((K2, HP, C2P), lambda i: (0, 0, 0)),   #   (re-DMA skipped when the
            pl.BlockSpec((1, C2P), lambda i: (0, 0)),           #   block index repeats)
            pl.BlockSpec((L2 * C2P, OUT_PAD), lambda i: (0, 0)),
            pl.BlockSpec((1, OUT_PAD), lambda i: (0, 0)),
        ],
        out_specs=pl.BlockSpec((BB, OUT_PAD), lambda i: (i, 0)),
        compiler_params=pltpu.CompilerParams(
            dimension_semantics=("parallel",),
            vmem_limit_bytes=32 * 1024 * 1024,   # safe headroom on v5e/v6e and v7x (64 MiB)
        ),
    )(x2, w1g, b1p, w2k, b2p, wfc_pad, bfc_pad)

    # slice the lane / batch padding back off in plain JAX
    return out[:B, :n_cls]


def imdbcnn_reference(x_emb, w1, b1, w2, b2, wfc, bfc):
    """Pure-JAX reference mirroring the PyTorch forward (NCW convs)."""
    x = jnp.transpose(x_emb, (0, 2, 1))                # (B, E, L)
    y = jax.lax.conv_general_dilated(x, w1, window_strides=(S1,), padding="VALID",
                                     dimension_numbers=("NCH", "OIH", "NCH"))
    y = jnp.maximum(y + b1[None, :, None], 0.0)
    y = jax.lax.conv_general_dilated(y, w2, window_strides=(S2,), padding="VALID",
                                     dimension_numbers=("NCH", "OIH", "NCH"))
    y = jnp.maximum(y + b2[None, :, None], 0.0)
    flat = y.reshape(y.shape[0], -1)
    return flat @ wfc.T + bfc


if __name__ == "__main__":
    key = jax.random.PRNGKey(0)
    k_tok, k_emb, k_w1, k_b1, k_w2, k_b2, k_wfc, k_bfc = jax.random.split(key, 8)

    # deterministic synthetic parameters (PyTorch weight layouts)
    emb_table = jax.random.normal(k_emb, (VOCAB, EMB_DIM), jnp.float32) * 0.1
    w1 = jax.random.normal(k_w1, (HIDDEN, EMB_DIM, K1), jnp.float32) * 0.05
    b1 = jax.random.normal(k_b1, (HIDDEN,), jnp.float32) * 0.05
    w2 = jax.random.normal(k_w2, (C2_OUT, HIDDEN, K2), jnp.float32) * 0.05
    b2 = jax.random.normal(k_b2, (C2_OUT,), jnp.float32) * 0.05
    wfc = jax.random.normal(k_wfc, (NUM_CLASSES, HIDDEN), jnp.float32) * 0.05
    bfc = jax.random.normal(k_bfc, (NUM_CLASSES,), jnp.float32) * 0.05

    # input tokens (B, L) int32; nn.Embedding lookup is a table gather -> plain-JAX glue
    tokens = jax.random.randint(k_tok, (BATCH, SEQ), 0, VOCAB, dtype=jnp.int32)
    x_emb = jnp.take(emb_table, tokens, axis=0)        # (B, L, E)

    ref = imdbcnn_reference(x_emb, w1, b1, w2, b2, wfc, bfc)

    # exact-dtype path: strict correctness check
    out_f32 = imdbcnn_pallas(x_emb, w1, b1, w2, b2, wfc, bfc, use_bf16=False)
    out_f32 = jax.block_until_ready(out_f32)
    np.testing.assert_allclose(np.asarray(out_f32), np.asarray(ref), rtol=1e-4, atol=1e-4)

    # bf16-matmul path (MXU-native operands, f32 accumulation): looser tolerance
    out_bf16 = imdbcnn_pallas(x_emb, w1, b1, w2, b2, wfc, bfc, use_bf16=True)
    out_bf16 = jax.block_until_ready(out_bf16)
    np.testing.assert_allclose(np.asarray(out_bf16), np.asarray(ref), rtol=5e-2, atol=1e-2)

    print("KERNEL_OK")
</pallas_src>

<mosaic_0001>
module attributes {stable_mosaic.version = 11 : i64} {
  func.func @kernel(%arg0: i32, %arg1: memref<192x128xf32, #tpu.memory_space<vmem>>, %arg2: memref<2x128x128xf32, #tpu.memory_space<vmem>>, %arg3: memref<1x128xf32, #tpu.memory_space<vmem>>, %arg4: memref<10x128x128xf32, #tpu.memory_space<vmem>>, %arg5: memref<1x128xf32, #tpu.memory_space<vmem>>, %arg6: memref<128x128xf32, #tpu.memory_space<vmem>>, %arg7: memref<1x128xf32, #tpu.memory_space<vmem>>, %arg8: memref<16x128xf32, #tpu.memory_space<vmem>>) attributes {dimension_semantics = [#tpu.dimension_semantics<parallel>], iteration_bounds = array<i64: 1>, scalar_prefetch = 0 : i64, scratch_operands = 0 : i64, tpu.core_type = #tpu.core_type<tc>, window_params = [{transform_indices = @transform_0, window_bounds = array<i64: 192, 128>}, {pipeline_mode = #tpu.pipeline_mode<synchronous>, transform_indices = @transform_1, window_bounds = array<i64: 2, 128, 128>}, {pipeline_mode = #tpu.pipeline_mode<synchronous>, transform_indices = @transform_2, window_bounds = array<i64: 1, 128>}, {pipeline_mode = #tpu.pipeline_mode<synchronous>, transform_indices = @transform_3, window_bounds = array<i64: 10, 128, 128>}, {pipeline_mode = #tpu.pipeline_mode<synchronous>, transform_indices = @transform_4, window_bounds = array<i64: 1, 128>}, {pipeline_mode = #tpu.pipeline_mode<synchronous>, transform_indices = @transform_5, window_bounds = array<i64: 128, 128>}, {pipeline_mode = #tpu.pipeline_mode<synchronous>, transform_indices = @transform_6, window_bounds = array<i64: 1, 128>}, {transform_indices = @transform_7, window_bounds = array<i64: 16, 128>}]} {
    %c0 = arith.constant 0 : index
    %c0_0 = arith.constant 0 : index
    %0 = vector.load %arg1[%c0, %c0_0] : memref<192x128xf32, #tpu.memory_space<vmem>>, vector<176x128xf32>
    %c0_1 = arith.constant 0 : index
    %c0_2 = arith.constant 0 : index
    %c0_3 = arith.constant 0 : index
    %1 = vector.load %arg2[%c0_1, %c0_2, %c0_3] : memref<2x128x128xf32, #tpu.memory_space<vmem>>, vector<1x128x128xf32>
    %2 = vector.shape_cast %1 : vector<1x128x128xf32> to vector<128x128xf32>
    %cst = arith.constant dense<0.000000e+00> : vector<176x128xf32>
    %3 = tpu.matmul %0, %2, %cst {dimension_numbers = #tpu.dot_dimension_numbers<[1], [0], [0], [1], [0, 0, 1, 1], [], []>} : vector<176x128xf32>, vector<128x128xf32>, vector<176x128xf32> -> vector<176x128xf32>
    %c16 = arith.constant 16 : index
    %c0_4 = arith.constant 0 : index
    %4 = vector.load %arg1[%c16, %c0_4] : memref<192x128xf32, #tpu.memory_space<vmem>>, vector<176x128xf32>
    %c1 = arith.constant 1 : index
    %c0_5 = arith.constant 0 : index
    %c0_6 = arith.constant 0 : index
    %5 = vector.load %arg2[%c1, %c0_5, %c0_6] : memref<2x128x128xf32, #tpu.memory_space<vmem>>, vector<1x128x128xf32>
    %6 = vector.shape_cast %5 : vector<1x128x128xf32> to vector<128x128xf32>
    %cst_7 = arith.constant dense<0.000000e+00> : vector<176x128xf32>
    %7 = tpu.matmul %4, %6, %cst_7 {dimension_numbers = #tpu.dot_dimension_numbers<[1], [0], [0], [1], [0, 0, 1, 1], [], []>} : vector<176x128xf32>, vector<128x128xf32>, vector<176x128xf32> -> vector<176x128xf32>
    %8 = arith.addf %3, %7 : vector<176x128xf32>
    %c0_8 = arith.constant 0 : index
    %c0_9 = arith.constant 0 : index
    %9 = vector.load %arg3[%c0_8, %c0_9] : memref<1x128xf32, #tpu.memory_space<vmem>>, vector<1x128xf32>
    %10 = vector.broadcast %9 : vector<1x128xf32> to vector<176x128xf32>
    %11 = arith.addf %8, %10 : vector<176x128xf32>
    %cst_10 = arith.constant 0.000000e+00 : f32
    %12 = vector.broadcast %cst_10 : f32 to vector<176x128xf32>
    %13 = arith.maximumf %11, %12 : vector<176x128xf32>
    %cst_11 = arith.constant 0.000000e+00 : f32
    %14 = vector.broadcast %cst_11 : f32 to vector<16x128xf32>
    %cst_12 = arith.constant 0.000000e+00 : f32
    %15 = vector.broadcast %cst_12 : f32 to vector<16x128xf32>
    %16 = vector.extract_strided_slice %13 {offsets = [0, 0], sizes = [16, 128], strides = [1, 1]} : vector<176x128xf32> to vector<16x128xf32>
    %c0_13 = arith.constant 0 : index
    %c0_14 = arith.constant 0 : index
    %c0_15 = arith.constant 0 : index
    %17 = vector.load %arg4[%c0_13, %c0_14, %c0_15] : memref<10x128x128xf32, #tpu.memory_space<vmem>>, vector<1x128x128xf32>
    %18 = vector.shape_cast %17 : vector<1x128x128xf32> to vector<128x128xf32>
    %cst_16 = arith.constant dense<0.000000e+00> : vector<16x128xf32>
    %19 = tpu.matmul %16, %18, %cst_16 {dimension_numbers = #tpu.dot_dimension_numbers<[1], [0], [0], [1], [0, 0, 1, 1], [], []>} : vector<16x128xf32>, vector<128x128xf32>, vector<16x128xf32> -> vector<16x128xf32>
    %20 = arith.addf %15, %19 : vector<16x128xf32>
    %21 = vector.extract_strided_slice %13 {offsets = [16, 0], sizes = [16, 128], strides = [1, 1]} : vector<176x128xf32> to vector<16x128xf32>
    %c1_17 = arith.constant 1 : index
    %c0_18 = arith.constant 0 : index
    %c0_19 = arith.constant 0 : index
    %22 = vector.load %arg4[%c1_17, %c0_18, %c0_19] : memref<10x128x128xf32, #tpu.memory_space<vmem>>, vector<1x128x128xf32>
    %23 = vector.shape_cast %22 : vector<1x128x128xf32> to vector<128x128xf32>
    %cst_20 = arith.constant dense<0.000000e+00> : vector<16x128xf32>
    %24 = tpu.matmul %21, %23, %cst_20 {dimension_numbers = #tpu.dot_dimension_numbers<[1], [0], [0], [1], [0, 0, 1, 1], [], []>} : vector<16x128xf32>, vector<128x128xf32>, vector<16x128xf32> -> vector<16x128xf32>
    %25 = arith.addf %20, %24 : vector<16x128xf32>
    %26 = vector.extract_strided_slice %13 {offsets = [32, 0], sizes = [16, 128], strides = [1, 1]} : vector<176x128xf32> to vector<16x128xf32>
    %c2 = arith.constant 2 : index
    %c0_21 = arith.constant 0 : index
    %c0_22 = arith.constant 0 : index
    %27 = vector.load %arg4[%c2, %c0_21, %c0_22] : memref<10x128x128xf32, #tpu.memory_space<vmem>>, vector<1x128x128xf32>
    %28 = vector.shape_cast %27 : vector<1x128x128xf32> to vector<128x128xf32>
    %cst_23 = arith.constant dense<0.000000e+00> : vector<16x128xf32>
    %29 = tpu.matmul %26, %28, %cst_23 {dimension_numbers = #tpu.dot_dimension_numbers<[1], [0], [0], [1], [0, 0, 1, 1], [], []>} : vector<16x128xf32>, vector<128x128xf32>, vector<16x128xf32> -> vector<16x128xf32>
    %30 = arith.addf %25, %29 : vector<16x128xf32>
    %31 = vector.extract_strided_slice %13 {offsets = [48, 0], sizes = [16, 128], strides = [1, 1]} : vector<176x128xf32> to vector<16x128xf32>
    %c3 = arith.constant 3 : index
    %c0_24 = arith.constant 0 : index
    %c0_25 = arith.constant 0 : index
    %32 = vector.load %arg4[%c3, %c0_24, %c0_25] : memref<10x128x128xf32, #tpu.memory_space<vmem>>, vector<1x128x128xf32>
    %33 = vector.shape_cast %32 : vector<1x128x128xf32> to vector<128x128xf32>
    %cst_26 = arith.constant dense<0.000000e+00> : vector<16x128xf32>
    %34 = tpu.matmul %31, %33, %cst_26 {dimension_numbers = #tpu.dot_dimension_numbers<[1], [0], [0], [1], [0, 0, 1, 1], [], []>} : vector<16x128xf32>, vector<128x128xf32>, vector<16x128xf32> -> vector<16x128xf32>
    %35 = arith.addf %30, %34 : vector<16x128xf32>
    %36 = vector.extract_strided_slice %13 {offsets = [64, 0], sizes = [16, 128], strides = [1, 1]} : vector<176x128xf32> to vector<16x128xf32>
    %c4 = arith.constant 4 : index
    %c0_27 = arith.constant 0 : index
    %c0_28 = arith.constant 0 : index
    %37 = vector.load %arg4[%c4, %c0_27, %c0_28] : memref<10x128x128xf32, #tpu.memory_space<vmem>>, vector<1x128x128xf32>
    %38 = vector.shape_cast %37 : vector<1x128x128xf32> to vector<128x128xf32>
    %cst_29 = arith.constant dense<0.000000e+00> : vector<16x128xf32>
    %39 = tpu.matmul %36, %38, %cst_29 {dimension_numbers = #tpu.dot_dimension_numbers<[1], [0], [0], [1], [0, 0, 1, 1], [], []>} : vector<16x128xf32>, vector<128x128xf32>, vector<16x128xf32> -> vector<16x128xf32>
    %40 = arith.addf %35, %39 : vector<16x128xf32>
    %41 = vector.extract_strided_slice %13 {offsets = [80, 0], sizes = [16, 128], strides = [1, 1]} : vector<176x128xf32> to vector<16x128xf32>
    %c5 = arith.constant 5 : index
    %c0_30 = arith.constant 0 : index
    %c0_31 = arith.constant 0 : index
    %42 = vector.load %arg4[%c5, %c0_30, %c0_31] : memref<10x128x128xf32, #tpu.memory_space<vmem>>, vector<1x128x128xf32>
    %43 = vector.shape_cast %42 : vector<1x128x128xf32> to vector<128x128xf32>
    %cst_32 = arith.constant dense<0.000000e+00> : vector<16x128xf32>
    %44 = tpu.matmul %41, %43, %cst_32 {dimension_numbers = #tpu.dot_dimension_numbers<[1], [0], [0], [1], [0, 0, 1, 1], [], []>} : vector<16x128xf32>, vector<128x128xf32>, vector<16x128xf32> -> vector<16x128xf32>
    %45 = arith.addf %40, %44 : vector<16x128xf32>
    %46 = vector.extract_strided_slice %13 {offsets = [96, 0], sizes = [16, 128], strides = [1, 1]} : vector<176x128xf32> to vector<16x128xf32>
    %c6 = arith.constant 6 : index
    %c0_33 = arith.constant 0 : index
    %c0_34 = arith.constant 0 : index
    %47 = vector.load %arg4[%c6, %c0_33, %c0_34] : memref<10x128x128xf32, #tpu.memory_space<vmem>>, vector<1x128x128xf32>
    %48 = vector.shape_cast %47 : vector<1x128x128xf32> to vector<128x128xf32>
    %cst_35 = arith.constant dense<0.000000e+00> : vector<16x128xf32>
    %49 = tpu.matmul %46, %48, %cst_35 {dimension_numbers = #tpu.dot_dimension_numbers<[1], [0], [0], [1], [0, 0, 1, 1], [], []>} : vector<16x128xf32>, vector<128x128xf32>, vector<16x128xf32> -> vector<16x128xf32>
    %50 = arith.addf %45, %49 : vector<16x128xf32>
    %51 = vector.extract_strided_slice %13 {offsets = [112, 0], sizes = [16, 128], strides = [1, 1]} : vector<176x128xf32> to vector<16x128xf32>
    %c7 = arith.constant 7 : index
    %c0_36 = arith.constant 0 : index
    %c0_37 = arith.constant 0 : index
    %52 = vector.load %arg4[%c7, %c0_36, %c0_37] : memref<10x128x128xf32, #tpu.memory_space<vmem>>, vector<1x128x128xf32>
    %53 = vector.shape_cast %52 : vector<1x128x128xf32> to vector<128x128xf32>
    %cst_38 = arith.constant dense<0.000000e+00> : vector<16x128xf32>
    %54 = tpu.matmul %51, %53, %cst_38 {dimension_numbers = #tpu.dot_dimension_numbers<[1], [0], [0], [1], [0, 0, 1, 1], [], []>} : vector<16x128xf32>, vector<128x128xf32>, vector<16x128xf32> -> vector<16x128xf32>
    %55 = arith.addf %50, %54 : vector<16x128xf32>
    %56 = vector.extract_strided_slice %13 {offsets = [128, 0], sizes = [16, 128], strides = [1, 1]} : vector<176x128xf32> to vector<16x128xf32>
    %c8 = arith.constant 8 : index
    %c0_39 = arith.constant 0 : index
    %c0_40 = arith.constant 0 : index
    %57 = vector.load %arg4[%c8, %c0_39, %c0_40] : memref<10x128x128xf32, #tpu.memory_space<vmem>>, vector<1x128x128xf32>
    %58 = vector.shape_cast %57 : vector<1x128x128xf32> to vector<128x128xf32>
    %cst_41 = arith.constant dense<0.000000e+00> : vector<16x128xf32>
    %59 = tpu.matmul %56, %58, %cst_41 {dimension_numbers = #tpu.dot_dimension_numbers<[1], [0], [0], [1], [0, 0, 1, 1], [], []>} : vector<16x128xf32>, vector<128x128xf32>, vector<16x128xf32> -> vector<16x128xf32>
    %60 = arith.addf %55, %59 : vector<16x128xf32>
    %61 = vector.extract_strided_slice %13 {offsets = [144, 0], sizes = [16, 128], strides = [1, 1]} : vector<176x128xf32> to vector<16x128xf32>
    %c9 = arith.constant 9 : index
    %c0_42 = arith.constant 0 : index
    %c0_43 = arith.constant 0 : index
    %62 = vector.load %arg4[%c9, %c0_42, %c0_43] : memref<10x128x128xf32, #tpu.memory_space<vmem>>, vector<1x128x128xf32>
    %63 = vector.shape_cast %62 : vector<1x128x128xf32> to vector<128x128xf32>
    %cst_44 = arith.constant dense<0.000000e+00> : vector<16x128xf32>
    %64 = tpu.matmul %61, %63, %cst_44 {dimension_numbers = #tpu.dot_dimension_numbers<[1], [0], [0], [1], [0, 0, 1, 1], [], []>} : vector<16x128xf32>, vector<128x128xf32>, vector<16x128xf32> -> vector<16x128xf32>
    %65 = arith.addf %60, %64 : vector<16x128xf32>
    %c0_45 = arith.constant 0 : index
    %c0_46 = arith.constant 0 : index
    %66 = vector.load %arg5[%c0_45, %c0_46] : memref<1x128xf32, #tpu.memory_space<vmem>>, vector<1x128xf32>
    %67 = vector.broadcast %66 : vector<1x128xf32> to vector<16x128xf32>
    %68 = arith.addf %65, %67 : vector<16x128xf32>
    %cst_47 = arith.constant 0.000000e+00 : f32
    %69 = vector.broadcast %cst_47 : f32 to vector<16x128xf32>
    %70 = arith.maximumf %68, %69 : vector<16x128xf32>
    %c0_48 = arith.constant 0 : index
    %c0_49 = arith.constant 0 : index
    %71 = vector.load %arg6[%c0_48, %c0_49] : memref<128x128xf32, #tpu.memory_space<vmem>>, vector<128x128xf32>
    %cst_50 = arith.constant dense<0.000000e+00> : vector<16x128xf32>
    %72 = tpu.matmul %70, %71, %cst_50 {dimension_numbers = #tpu.dot_dimension_numbers<[1], [0], [0], [1], [0, 0, 1, 1], [], []>} : vector<16x128xf32>, vector<128x128xf32>, vector<16x128xf32> -> vector<16x128xf32>
    %73 = arith.addf %14, %72 : vector<16x128xf32>
    %c0_51 = arith.constant 0 : index
    %c0_52 = arith.constant 0 : index
    %74 = vector.load %arg7[%c0_51, %c0_52] : memref<1x128xf32, #tpu.memory_space<vmem>>, vector<1x128xf32>
    %75 = vector.broadcast %74 : vector<1x128xf32> to vector<16x128xf32>
    %76 = arith.addf %73, %75 : vector<16x128xf32>
    %c0_53 = arith.constant 0 : index
    %c0_54 = arith.constant 0 : index
    %77 = vector.load %arg8[%c0_53, %c0_54] : memref<16x128xf32, #tpu.memory_space<vmem>>, vector<16x128xf32>
    tpu.vector_store %arg8[%c0_53, %c0_54], %76 {strides = array<i32>} : memref<16x128xf32, #tpu.memory_space<vmem>>, vector<16x128xf32>,
    return
  }
  func.func @transform_0(%arg0: i32) -> (i32, i32) {
    %c0_i32 = arith.constant 0 : i32
    %c0_i32_0 = arith.constant 0 : i32
    return %arg0, %c0_i32 : i32, i32
  }
  func.func @transform_1(%arg0: i32) -> (i32, i32, i32) {
    %c0_i32 = arith.constant 0 : i32
    %c0_i32_0 = arith.constant 0 : i32
    %c0_i32_1 = arith.constant 0 : i32
    %c0_i32_2 = arith.constant 0 : i32
    return %c0_i32, %c0_i32_0, %c0_i32_1 : i32, i32, i32
  }
  func.func @transform_2(%arg0: i32) -> (i32, i32) {
    %c0_i32 = arith.constant 0 : i32
    %c0_i32_0 = arith.constant 0 : i32
    %c0_i32_1 = arith.constant 0 : i32
    return %c0_i32, %c0_i32_0 : i32, i32
  }
  func.func @transform_3(%arg0: i32) -> (i32, i32, i32) {
    %c0_i32 = arith.constant 0 : i32
    %c0_i32_0 = arith.constant 0 : i32
    %c0_i32_1 = arith.constant 0 : i32
    %c0_i32_2 = arith.constant 0 : i32
    return %c0_i32, %c0_i32_0, %c0_i32_1 : i32, i32, i32
  }
  func.func @transform_4(%arg0: i32) -> (i32, i32) {
    %c0_i32 = arith.constant 0 : i32
    %c0_i32_0 = arith.constant 0 : i32
    %c0_i32_1 = arith.constant 0 : i32
    return %c0_i32, %c0_i32_0 : i32, i32
  }
  func.func @transform_5(%arg0: i32) -> (i32, i32) {
    %c0_i32 = arith.constant 0 : i32
    %c0_i32_0 = arith.constant 0 : i32
    %c0_i32_1 = arith.constant 0 : i32
    return %c0_i32, %c0_i32_0 : i32, i32
  }
  func.func @transform_6(%arg0: i32) -> (i32, i32) {
    %c0_i32 = arith.constant 0 : i32
    %c0_i32_0 = arith.constant 0 : i32
    %c0_i32_1 = arith.constant 0 : i32
    return %c0_i32, %c0_i32_0 : i32, i32
  }
  func.func @transform_7(%arg0: i32) -> (i32, i32) {
    %c0_i32 = arith.constant 0 : i32
    %c0_i32_0 = arith.constant 0 : i32
    return %arg0, %c0_i32 : i32, i32
  }
}

</mosaic_0001>

<bundles_post_ra>
// kernel: imdbcnn_pallas.1
= control target key start
LH: loop header
LB: loop body
LE: loop exit
PB: predicated region body
PF: predicated region fallthrough
CT: control target
= control target key end

     0   :  { %s3827_s1 = inlined_call_operand.vmem [shape: f32[2,128,128], index: 1, kind: input, shape index: {}]   ;;  %s3828_s0 = inlined_call_operand.vmem [shape: f32[192,128], index: 0, kind: input, shape index: {}]   ;;  %s3829_s3 = inlined_call_operand.vmem [shape: f32[10,128,128], index: 3, kind: input, shape index: {}]   ;;  %s3830_s2 = inlined_call_operand.vmem [shape: f32[1,128], index: 2, kind: input, shape index: {}]   ;;  %s3831_s5 = inlined_call_operand.vmem [shape: f32[128,128], index: 5, kind: input, shape index: {}]   ;;  %s3832_s4 = inlined_call_operand.vmem [shape: f32[1,128], index: 4, kind: input, shape index: {}]   ;;  %s3833_s6 = inlined_call_operand.vmem [shape: f32[1,128], index: 6, kind: input, shape index: {}]   ;;  %s3834_s7 = inlined_call_operand.vmem [shape: f32[16,128], index: 7, kind: output, shape index: {}]  }
   0x1   :  { %v1546_v0 = vld [vmem:[%s3827_s1 + $0x80] sm:$0xff]  ;;  %v1547_v1 = vld [vmem:[%s3827_s1 + $0x88] sm:$0xff]  ;;  %v1548_v2 = vld [vmem:[%s3827_s1 + $0x90] sm:$0xff] }
   0x2   :  { %v2498_v3 = vpack.c.bf16 %v1547_v1, %v1546_v0  ;;  %v1549_v4 = vld [vmem:[%s3827_s1 + $0x98] sm:$0xff]  ;;  %v1550_v6 = vld [vmem:[%s3827_s1 + $0xa0] sm:$0xff]  ;;  %v1551_v7 = vld [vmem:[%s3827_s1 + $0xa8] sm:$0xff] }
   0x3   :  { %v2502_v5 = vpack.c.bf16 %v1549_v4, %v1548_v2  ;;  %v2506_v8 = vpack.c.bf16 %v1551_v7, %v1550_v6  ;;  %v3013_v9 = vld [vmem:[%s3828_s0 + $0x10] sm:$0xff]  ;;  %v1553_v11 = vld [vmem:[%s3827_s1 + $0xb8] sm:$0xff]  ;;  %v1554_v13 = vld [vmem:[%s3827_s1 + $0xc0] sm:$0xff] }
   0x4   :  { %2499 = vmatprep.subr.bf16.mxu0 %v2498_v3  ;;  %v1552_v10 = vld [vmem:[%s3827_s1 + $0xb0] sm:$0xff]  ;;  %2015 = vmatprep.mubr.f32.mxu0 %v3013_v9  ;;  %v1555_v14 = vld [vmem:[%s3827_s1 + $0xc8] sm:$0xff]  ;;  %v1557_v17 = vld [vmem:[%s3827_s1 + $0xd8] sm:$0xff] }
   0x5   :  { %2501 = vmatpush3.bf16.msra.mxu0 %v2498_v3  ;;  %v2510_v12 = vpack.c.bf16 %v1553_v11, %v1552_v10  ;;  %v2514_v15 = vpack.c.bf16 %v1555_v14, %v1554_v13  ;;  %v1556_v16 = vld [vmem:[%s3827_s1 + $0xd0] sm:$0xff]  ;;  %v1558_v19 = vld [vmem:[%s3827_s1 + $0xe0] sm:$0xff]  ;;  %v1559_v20 = vld [vmem:[%s3827_s1 + $0xe8] sm:$0xff] }
   0x6   :  { %2503 = vmatprep.subr.bf16.mxu0 %v2502_v5  ;;  %v2518_v18 = vpack.c.bf16 %v1557_v17, %v1556_v16  ;;  %v1595_v21 = vld [vmem:[%s3829_s3 + $0x180] sm:$0xff]  ;;  %v2522_v22 = vpack.c.bf16 %v1559_v20, %v1558_v19  ;;  %v1560_v23 = vld [vmem:[%s3827_s1 + $0xf0] sm:$0xff]  ;;  %v1596_v24 = vld [vmem:[%s3829_s3 + $0x188] sm:$0xff] }
   0x7   :  { %v1561_v25 = vld [vmem:[%s3827_s1 + $0xf8] sm:$0xff]  ;;  %v2658_v26 = vpack.c.bf16 %v1596_v24, %v1595_v21  ;;  %v1597_v27 = vld [vmem:[%s3829_s3 + $0x190] sm:$0xff]  ;;  %v1599_v30 = vld [vmem:[%s3829_s3 + $0x1a0] sm:$0xff] }
   0x8   :  { %v1598_v28 = vld [vmem:[%s3829_s3 + $0x198] sm:$0xff]  ;;  %v1600_v31 = vld [vmem:[%s3829_s3 + $0x1a8] sm:$0xff]  ;;  %v2526_v32 = vpack.c.bf16 %v1561_v25, %v1560_v23  ;;  %v48_v33 = vld [vmem:[%s3827_s1] sm:$0xff] }
   0x9   :  { %2505 = vmatpush3.bf16.msra.mxu0 %v2502_v5  ;;  %v2662_v29 = vpack.c.bf16 %v1598_v28, %v1597_v27  ;;  %2659 = vmatprep.subr.bf16.mxu1 %v2658_v26  ;;  %v49_v34 = vld [vmem:[%s3827_s1 + $0x8] sm:$0xff]  ;;  %v2666_v35 = vpack.c.bf16 %v1600_v31, %v1599_v30  ;;  %v50_v37 = vld [vmem:[%s3827_s1 + $0x10] sm:$0xff]  ;;  %v51_v38 = vld [vmem:[%s3827_s1 + $0x18] sm:$0xff] }
   0xa   :  { %2507 = vmatprep.subr.bf16.mxu0 %v2506_v8  ;;  %2661 = vmatpush3.bf16.msra.mxu1 %v2658_v26  ;;  %v2530_v36 = vpack.c.bf16 %v49_v34, %v48_v33  ;;  %v3079_v39 = vld [vmem:[%s3828_s0 + $0x18] sm:$0xff]  ;;  %v3084_v40 = vld [vmem:[%s3828_s0 + $0x20] sm:$0xff]  ;;  %v2534_v41 = vpack.c.bf16 %v51_v38, %v50_v37  ;;  %v53_v43 = vld [vmem:[%s3827_s1 + $0x28] sm:$0xff] }
   0xb   :  { %2663 = vmatprep.subr.bf16.mxu1 %v2662_v29  ;;  %v52_v42 = vld [vmem:[%s3827_s1 + $0x20] sm:$0xff]  ;;  %v3097_v44 = vld [vmem:[%s3828_s0 + $0x28] sm:$0xff]  ;;  %v3102_v45 = vld [vmem:[%s3828_s0 + $0x30] sm:$0xff] }
   0xc   :  { %v2538_v46 = vpack.c.bf16 %v53_v43, %v52_v42  ;;  %v54_v47 = vld [vmem:[%s3827_s1 + $0x30] sm:$0xff]  ;;  %v55_v48 = vld [vmem:[%s3827_s1 + $0x38] sm:$0xff]  ;;  %v3120_v50 = vld [vmem:[%s3828_s0 + $0x40] sm:$0xff] }
   0xd   :  { %2509 = vmatpush3.bf16.msra.mxu0 %v2506_v8  ;;  %v3115_v49 = vld [vmem:[%s3828_s0 + $0x38] sm:$0xff]  ;;  %v2542_v51 = vpack.c.bf16 %v55_v48, %v54_v47  ;;  %v56_v52 = vld [vmem:[%s3827_s1 + $0x40] sm:$0xff]  ;;  %v57_v53 = vld [vmem:[%s3827_s1 + $0x48] sm:$0xff] }
   0xe   :  { %2511 = vmatprep.subr.bf16.mxu0 %v2510_v12  ;;  %2665 = vmatpush3.bf16.msra.mxu1 %v2662_v29  ;;  %v3133_v54 = vld [vmem:[%s3828_s0 + $0x48] sm:$0xff]  ;;  %v3138_v55 = vld [vmem:[%s3828_s0 + $0x50] sm:$0xff]  ;;  %v2546_v56 = vpack.c.bf16 %v57_v53, %v56_v52  ;;  %v59_v58 = vld [vmem:[%s3827_s1 + $0x58] sm:$0xff] }
   0xf   :  { %2667 = vmatprep.subr.bf16.mxu1 %v2666_v35  ;;  %v58_v57 = vld [vmem:[%s3827_s1 + $0x50] sm:$0xff]  ;;  %v3151_v59 = vld [vmem:[%s3828_s0 + $0x58] sm:$0xff]  ;;  %v3156_v60 = vld [vmem:[%s3828_s0 + $0x60] sm:$0xff] }
  0x10   :  { %v2550_v61 = vpack.c.bf16 %v59_v58, %v58_v57  ;;  %v60_v62 = vld [vmem:[%s3827_s1 + $0x60] sm:$0xff]  ;;  %v61_v63 = vld [vmem:[%s3827_s1 + $0x68] sm:$0xff]  ;;  %v3174_v1 = vld [vmem:[%s3828_s0 + $0x70] sm:$0xff] }
  0x11   :  { %2513 = vmatpush3.bf16.msra.mxu0 %v2510_v12  ;;  %v3169_v0 = vld [vmem:[%s3828_s0 + $0x68] sm:$0xff]  ;;  %v2554_v2 = vpack.c.bf16 %v61_v63, %v60_v62  ;;  %v62_v3 = vld [vmem:[%s3827_s1 + $0x70] sm:$0xff]  ;;  %v63_v4 = vld [vmem:[%s3827_s1 + $0x78] sm:$0xff] }
  0x12   :  { %2515 = vmatprep.subr.bf16.mxu0 %v2514_v15  ;;  %2669 = vmatpush3.bf16.msra.mxu1 %v2666_v35  ;;  %v3187_v5 = vld [vmem:[%s3828_s0 + $0x78] sm:$0xff]  ;;  %v3192_v6 = vld [vmem:[%s3828_s0 + $0x80] sm:$0xff]  ;;  %v2558_v7 = vpack.c.bf16 %v63_v4, %v62_v3  ;;  %v1564_v10 = vld [vmem:[%s3829_s3 + $0x88] sm:$0xff] }
  0x13   :  { %v1563_v8 = vld [vmem:[%s3829_s3 + $0x80] sm:$0xff]  ;;  %v79_v11 = vld [vmem:[%s3828_s0 + $0x88] sm:$0xff]  ;;  %v80_v12 = vld [vmem:[%s3828_s0 + $0x90] sm:$0xff] }
  0x14   :  { %v2562_v13 = vpack.c.bf16 %v1564_v10, %v1563_v8  ;;  %v81_v14 = vld [vmem:[%s3828_s0 + $0x98] sm:$0xff]  ;;  %v83_v16 = vld [vmem:[%s3828_s0 + $0xa8] sm:$0xff]  ;;  %v84_v17 = vld [vmem:[%s3828_s0 + $0xb0] sm:$0xff] }
  0x15   :  { %2517 = vmatpush3.bf16.msra.mxu0 %v2514_v15  ;;  %v82_v15 = vld [vmem:[%s3828_s0 + $0xa0] sm:$0xff]  ;;  %v1565_v20 = vld [vmem:[%s3829_s3 + $0x90] sm:$0xff]  ;;  %v1566_v21 = vld [vmem:[%s3829_s3 + $0x98] sm:$0xff] }
  0x16   :  { %2519 = vmatprep.subr.bf16.mxu0 %v2518_v18  ;;  %v26_v19 = vld [vmem:[%s3828_s0] sm:$0xff]  ;;  %v2566_v23 = vpack.c.bf16 %v1566_v21, %v1565_v20  ;;  %v1568_v25 = vld [vmem:[%s3829_s3 + $0xa8] sm:$0xff]  ;;  %v1569_v27 = vld [vmem:[%s3829_s3 + $0xb0] sm:$0xff] }
  0x17   :  { %v1567_v24 = vld [vmem:[%s3829_s3 + $0xa0] sm:$0xff]  ;;  %v1570_v28 = vld [vmem:[%s3829_s3 + $0xb8] sm:$0xff]  ;;  %v1572_v30 = vld [vmem:[%s3829_s3 + $0xc8] sm:$0xff] }
  0x18   :  { %v2570_v26 = vpack.c.bf16 %v1568_v25, %v1567_v24  ;;  %v2574_v29 = vpack.c.bf16 %v1570_v28, %v1569_v27  ;;  %v1574_v33 = vld [vmem:[%s3829_s3 + $0xd8] sm:$0xff]  ;;  %v1601_v34 = vld [vmem:[%s3829_s3 + $0x1b0] sm:$0xff]  ;;  %v1575_v38 = vld [vmem:[%s3829_s3 + $0xe0] sm:$0xff] }
  0x19   :  { %2521 = vmatpush3.bf16.msra.mxu0 %v2518_v18  ;;  %v85_v18 = vld [vmem:[%s3828_s0 + $0xb8] sm:$0xff]  ;;  %v1604_v42 = vld [vmem:[%s3829_s3 + $0x1c8] sm:$0xff]  ;;  %v1607_v52 = vld [vmem:[%s3829_s3 + $0x1e0] sm:$0xff] }
  0x1a   :  { %2523 = vmatprep.subr.bf16.mxu0 %v2522_v22  ;;  %v1606_v48 = vld [vmem:[%s3829_s3 + $0x1d8] sm:$0xff]  ;;  %v498_v8 = vld [vmem:[%s3829_s3 + $0x10] sm:$0xff] }
  0x1b   :  { %v1610_v57 = vld [vmem:[%s3829_s3 + $0x1f8] sm:$0xff]  ;;  %v502_v24 = vld [vmem:[%s3829_s3 + $0x30] sm:$0xff] }
  0x1c   :  { %v499_v10 = vld [vmem:[%s3829_s3 + $0x18] sm:$0xff]  ;;  %v1613_v27 = vld [vmem:[%s3829_s3 + $0x210] sm:$0xff] }
  0x1d   :  { %2525 = vmatpush3.bf16.msra.mxu0 %v2522_v22  ;;  %v27_v22 = vld [vmem:[%s3828_s0 + $0x8] sm:$0xff]  ;;  %v1614_v28 = vld [vmem:[%s3829_s3 + $0x218] sm:$0xff] }
  0x1e   :  { %2527 = vmatprep.subr.bf16.mxu0 %v2526_v32 }
  0x21   :  { %2529 = vmatpush3.bf16.msra.mxu0 %v2526_v32  ;;  %v1573_v32 = vld [vmem:[%s3829_s3 + $0xd0] sm:$0xff] }
  0x22   :  { %2531 = vmatprep.subr.bf16.mxu0 %v2530_v36  ;;  %v2582_v35 = vpack.c.bf16 %v1574_v33, %v1573_v32  ;;  %v2694_v33 = vpack.c.bf16 %v1614_v28, %v1613_v27  ;;  %v1581_v28 = vld [vmem:[%s3829_s3 + $0x110] sm:$0xff] }
  0x24   :  { %2016 = vmatmul.mubr.f32.vlgmr.msra.gmra.mrb[0].mxu0 %v3079_v39 }
  0x25   :  { %2533 = vmatpush3.bf16.msra.mxu0 %v2530_v36  ;;  %2018 = vmatprep.mubr.f32.mxu0 %v3084_v40  ;;  %v1602_v36 = vld [vmem:[%s3829_s3 + $0x1b8] sm:$0xff] }
  0x26   :  { %2535 = vmatprep.subr.bf16.mxu0 %v2534_v41  ;;  %v2670_v37 = vpack.c.bf16 %v1602_v36, %v1601_v34  ;;  %v504_v34 = vld [vmem:[%s3829_s3 + $0x40] sm:$0xff]  ;;  %v505_v36 = vld [vmem:[%s3829_s3 + $0x48] sm:$0xff] }
  0x28   :  { %2019 = vmatmul.mubr.f32.gmra.mrb[2].mxu0 %v3097_v44  ;;  %2671 = vmatprep.subr.bf16.mxu1 %v2670_v37 }
  0x29   :  { %2021 = vmatprep.mubr.f32.mxu0 %v3102_v45  ;;  %2537 = vmatpush3.bf16.msra.mxu0 %v2534_v41 }
  0x2a   :  { %2539 = vmatprep.subr.bf16.mxu0 %v2538_v46  ;;  %2673 = vmatpush3.bf16.msra.mxu1 %v2670_v37  ;;  %v1615_v37 = vld [vmem:[%s3829_s3 + $0x220] sm:$0xff] }
  0x2c   :  { %2022 = vmatmul.mubr.f32.gmra.mrb[4].mxu0 %v3115_v49 }
  0x2d   :  { %2024 = vmatprep.mubr.f32.mxu0 %v3120_v50  ;;  %2541 = vmatpush3.bf16.msra.mxu0 %v2538_v46  ;;  %v1605_v46 = vld [vmem:[%s3829_s3 + $0x1d0] sm:$0xff] }
  0x2e   :  { %2543 = vmatprep.subr.bf16.mxu0 %v2542_v51 }
  0x30   :  { %2025 = vmatmul.mubr.f32.gmra.mrb[6].mxu0 %v3133_v54 }
  0x31   :  { %2027 = vmatprep.mubr.f32.mxu0 %v3138_v55  ;;  %2545 = vmatpush3.bf16.msra.mxu0 %v2542_v51  ;;  %v497_v51 = vld [vmem:[%s3829_s3 + $0x8] sm:$0xff] }
  0x32   :  { %2547 = vmatprep.subr.bf16.mxu0 %v2546_v56 }
  0x34   :  { %2028 = vmatmul.mubr.f32.gmra.mrb[8].mxu0 %v3151_v59 }
  0x35   :  { %2030 = vmatprep.mubr.f32.mxu0 %v3156_v60  ;;  %2549 = vmatpush3.bf16.msra.mxu0 %v2546_v56  ;;  %v1609_v56 = vld [vmem:[%s3829_s3 + $0x1f0] sm:$0xff] }
  0x36   :  { %2551 = vmatprep.subr.bf16.mxu0 %v2550_v61  ;;  %v2686_v58 = vpack.c.bf16 %v1610_v57, %v1609_v56  ;;  %v509_v56 = vld [vmem:[%s3829_s3 + $0x68] sm:$0xff]  ;;  %v1619_v57 = vld [vmem:[%s3829_s3 + $0x240] sm:$0xff] }
  0x38   :  { %2031 = vmatmul.mubr.f32.gmra.mrb[10].mxu0 %v3169_v0 }
  0x39   :  { %2033 = vmatprep.mubr.f32.mxu0 %v3174_v1  ;;  %2553 = vmatpush3.bf16.msra.mxu0 %v2550_v61 }
  0x3a   :  { %2555 = vmatprep.subr.bf16.mxu0 %v2554_v2 }
  0x3c   :  { %2034 = vmatmul.mubr.f32.gmra.mrb[12].mxu0 %v3187_v5 }
  0x3d   :  { %2036 = vmatprep.mubr.f32.mxu0 %v3192_v6  ;;  %2557 = vmatpush3.bf16.msra.mxu0 %v2554_v2  ;;  %v3333_v2 = vld [vmem:[%s3830_s2] ss:$0 sm:$0xff] }
  0x3e   :  { %2559 = vmatprep.subr.bf16.mxu0 %v2558_v7 }
  0x40   :  { %2037 = vmatmul.mubr.f32.gmra.mrb[14].mxu0 %v79_v11 }
  0x41   :  { %2039 = vmatprep.mubr.f32.mxu0 %v80_v12  ;;  %2561 = vmatpush3.bf16.msra.mxu0 %v2558_v7 }
  0x42   :  { %2563 = vmatprep.subr.bf16.mxu0 %v2562_v13 }
  0x44   :  { %2040 = vmatmul.mubr.f32.gmra.mrb[16].mxu0 %v81_v14 }
  0x45   :  { %2042 = vmatprep.mubr.f32.mxu0 %v82_v15 }
  0x48   :  { %2043 = vmatmul.mubr.f32.gmra.mrb[18].mxu0 %v83_v16 }
  0x49   :  { %2045 = vmatprep.mubr.f32.mxu0 %v84_v17 }
  0x4c   :  { %2046 = vmatmul.mubr.f32.gmra.mrb[20].mxu0 %v85_v18  ;;  %v500_v18 = vld [vmem:[%s3829_s3 + $0x20] sm:$0xff] }
  0x4d   :  { %2080 = vmatprep.mubr.f32.mxu0 %v26_v19  ;;  %v501_v19 = vld [vmem:[%s3829_s3 + $0x28] sm:$0xff] }
  0x50   :  { %2081 = vmatmul.mubr.f32.vlgmr.msra.gmra.mrb[0].mxu0 %v27_v22 }
  0x51   :  { %2083 = vmatprep.mubr.f32.mxu0 %v3013_v9  ;;  %2565 = vmatpush3.bf16.msra.mxu0 %v2562_v13  ;;  %v1571_v9 = vld [vmem:[%s3829_s3 + $0xc0] sm:$0xff] }
  0x52   :  { %2567 = vmatprep.subr.bf16.mxu0 %v2566_v23  ;;  %v2578_v31 = vpack.c.bf16 %v1572_v30, %v1571_v9 }
  0x54   :  { %2084 = vmatmul.mubr.f32.gmra.mrb[2].mxu0 %v3079_v39  ;;  %v1576_v39 = vld [vmem:[%s3829_s3 + $0xe8] sm:$0xff] }
  0x55   :  { %2086 = vmatprep.mubr.f32.mxu0 %v3084_v40  ;;  %2569 = vmatpush3.bf16.msra.mxu0 %v2566_v23  ;;  %v1603_v40 = vld [vmem:[%s3829_s3 + $0x1c0] sm:$0xff]  ;;  %v2586_v41 = vpack.c.bf16 %v1576_v39, %v1575_v38  ;;  %v2602_v23 = vpack.c.bf16 %v501_v19, %v500_v18  ;;  %v1616_v38 = vld [vmem:[%s3829_s3 + $0x228] sm:$0xff] }
  0x56   :  { %2571 = vmatprep.subr.bf16.mxu0 %v2570_v26  ;;  %v2674_v43 = vpack.c.bf16 %v1604_v42, %v1603_v40  ;;  %v1623_v18 = vld [vmem:[%s3829_s3 + $0x260] sm:$0xff]  ;;  %v1624_v19 = vld [vmem:[%s3829_s3 + $0x268] sm:$0xff] }
  0x58   :  { %2087 = vmatmul.mubr.f32.gmra.mrb[4].mxu0 %v3097_v44  ;;  %2675 = vmatprep.subr.bf16.mxu1 %v2674_v43  ;;  %v1577_v44 = vld [vmem:[%s3829_s3 + $0xf0] sm:$0xff] }
  0x59   :  { %2089 = vmatprep.mubr.f32.mxu0 %v3102_v45  ;;  %2573 = vmatpush3.bf16.msra.mxu0 %v2570_v26  ;;  %v1578_v45 = vld [vmem:[%s3829_s3 + $0xf8] sm:$0xff] }
  0x5a   :  { %2575 = vmatprep.subr.bf16.mxu0 %v2574_v29  ;;  %2677 = vmatpush3.bf16.msra.mxu1 %v2674_v43  ;;  %v2590_v47 = vpack.c.bf16 %v1578_v45, %v1577_v44  ;;  %v503_v26 = vld [vmem:[%s3829_s3 + $0x38] sm:$0xff]  ;;  %v2610_v43 = vpack.c.bf16 %v505_v36, %v504_v34  ;;  %v2698_v44 = vpack.c.bf16 %v1616_v38, %v1615_v37  ;;  %v506_v45 = vld [vmem:[%s3829_s3 + $0x50] sm:$0xff]  ;;  %v1583_v36 = vld [vmem:[%s3829_s3 + $0x120] sm:$0xff] }
  0x5b   :  { %v2606_v32 = vpack.c.bf16 %v503_v26, %v502_v24  ;;  %v1584_v37 = vld [vmem:[%s3829_s3 + $0x128] sm:$0xff]  ;;  %v1627_v38 = vld [vmem:[%s3829_s3 + $0x280] sm:$0xff] }
  0x5c   :  { %2090 = vmatmul.mubr.f32.gmra.mrb[6].mxu0 %v3115_v49  ;;  %v2678_v49 = vpack.c.bf16 %v1606_v48, %v1605_v46  ;;  %v507_v46 = vld [vmem:[%s3829_s3 + $0x58] sm:$0xff] }
  0x5d   :  { %2092 = vmatprep.mubr.f32.mxu0 %v3120_v50  ;;  %2577 = vmatpush3.bf16.msra.mxu0 %v2574_v29  ;;  %v496_v50 = vld [vmem:[%s3829_s3] sm:$0xff]  ;;  %v1618_v48 = vld [vmem:[%s3829_s3 + $0x238] sm:$0xff] }
  0x5e   :  { %2579 = vmatprep.subr.bf16.mxu0 %v2578_v31  ;;  %2679 = vmatprep.subr.bf16.mxu1 %v2678_v49  ;;  %v2594_v53 = vpack.c.bf16 %v497_v51, %v496_v50 }
  0x5f   :  { %2681 = vmatpush3.bf16.msra.mxu1 %v2678_v49 }
  0x60   :  { %2093 = vmatmul.mubr.f32.gmra.mrb[8].mxu0 %v3133_v54  ;;  %v1608_v54 = vld [vmem:[%s3829_s3 + $0x1e8] sm:$0xff] }
  0x61   :  { %2095 = vmatprep.mubr.f32.mxu0 %v3138_v55  ;;  %2581 = vmatpush3.bf16.msra.mxu0 %v2578_v31  ;;  %v2682_v55 = vpack.c.bf16 %v1608_v54, %v1607_v52  ;;  %v2614_v52 = vpack.c.bf16 %v507_v46, %v506_v45  ;;  %v508_v54 = vld [vmem:[%s3829_s3 + $0x60] sm:$0xff]  ;;  %v1585_v45 = vld [vmem:[%s3829_s3 + $0x130] sm:$0xff] }
  0x62   :  { %2583 = vmatprep.subr.bf16.mxu0 %v2582_v35 }
  0x63   :  { %2683 = vmatprep.subr.bf16.mxu1 %v2682_v55 }
  0x64   :  { %2096 = vmatmul.mubr.f32.gmra.mrb[10].mxu0 %v3151_v59  ;;  %2685 = vmatpush3.bf16.msra.mxu1 %v2682_v55  ;;  %v1611_v59 = vld [vmem:[%s3829_s3 + $0x200] sm:$0xff] }
  0x65   :  { %2098 = vmatprep.mubr.f32.mxu0 %v3156_v60  ;;  %2585 = vmatpush3.bf16.msra.mxu0 %v2582_v35  ;;  %v1612_v60 = vld [vmem:[%s3829_s3 + $0x208] sm:$0xff] }
  0x66   :  { %2587 = vmatprep.subr.bf16.mxu0 %v2586_v41  ;;  %2687 = vmatprep.subr.bf16.mxu1 %v2686_v58  ;;  %v2690_v61 = vpack.c.bf16 %v1612_v60, %v1611_v59 }
  0x68   :  { %2099 = vmatmul.mubr.f32.gmra.mrb[12].mxu0 %v3169_v0  ;;  %2689 = vmatpush3.bf16.msra.mxu1 %v2686_v58  ;;  %v1620_v58 = vld [vmem:[%s3829_s3 + $0x248] sm:$0xff] }
  0x69   :  { %2101 = vmatprep.mubr.f32.mxu0 %v3174_v1  ;;  %2589 = vmatpush3.bf16.msra.mxu0 %v2586_v41 }
  0x6a   :  { %2591 = vmatprep.subr.bf16.mxu0 %v2590_v47  ;;  %2691 = vmatprep.subr.bf16.mxu1 %v2690_v61 }
  0x6c   :  { %2102 = vmatmul.mubr.f32.gmra.mrb[14].mxu0 %v3187_v5 }
  0x6d   :  { %2104 = vmatprep.mubr.f32.mxu0 %v3192_v6  ;;  %2593 = vmatpush3.bf16.msra.mxu0 %v2590_v47  ;;  %v1617_v47 = vld [vmem:[%s3829_s3 + $0x230] sm:$0xff] }
  0x6e   :  { %2595 = vmatprep.subr.bf16.mxu0 %v2594_v53 }
  0x70   :  { %2105 = vmatmul.mubr.f32.gmra.mrb[16].mxu0 %v79_v11 }
  0x71   :  { %2107 = vmatprep.mubr.f32.mxu0 %v80_v12 }
  0x74   :  { %2108 = vmatmul.mubr.f32.gmra.mrb[18].mxu0 %v81_v14 }
  0x75   :  { %2110 = vmatprep.mubr.f32.mxu0 %v82_v15 }
  0x78   :  { %2111 = vmatmul.mubr.f32.gmra.mrb[22].mxu0 %v83_v16  ;;  %v2598_v16 = vpack.c.bf16 %v499_v10, %v498_v8 }
 0x11f   :  { %v2047_v62 = vpop.f32.mrb[20].mxu0 }
 0x120   :  { %v269_v63 = vpop.f32.mrb[21].mxu0  ;;  %v2618_v62 = vpack.c.bf16 %v509_v56, %v508_v54  ;;  %v1631_v54 = vld [vmem:[%s3829_s3 + $0x2a0] sm:$0xff]  ;;  %v1632_v56 = vld [vmem:[%s3829_s3 + $0x2a8] sm:$0xff] }
 0x121   :  { %v2706_v63 = vpack.c.bf16 %v1620_v58, %v1619_v57  ;;  %v2730_v58 = vpack.c.bf16 %v1632_v56, %v1631_v54  ;;  %v1661_v56 = vld [vmem:[%s3829_s3 + $0x390] sm:$0xff] }
 0x123   :  { %v3328_v0 = vpop.f32.mrb[0].mxu0 }
 0x124   :  { %v342_v1 = vpop.f32.mrb[1].mxu0 }
 0x125   :  { %v456_v6 = vadd.f32 %v3333_v2, %v342_v1  ;;  %v510_v1 = vld [vmem:[%s3829_s3 + $0x70] sm:$0xff] }
 0x127   :  { %v2085_v3 = vpop.f32.mrb[2].mxu0  ;;  %v476_v17 = vmax.f32 %v456_v6, 0.0  ;;  %v1622_v6 = vld [vmem:[%s3829_s3 + $0x258] sm:$0xff] }
 0x128   :  { %v459_v4 = vadd.f32 %v2085_v3, %v3333_v2  ;;  %v352_v5 = vpop.f32.mrb[3].mxu0 }
 0x129   :  { %v458_v7 = vadd.f32 %v3333_v2, %v352_v5  ;;  %v1621_v5 = vld [vmem:[%s3829_s3 + $0x250] sm:$0xff] }
 0x12a   :  { %v479_v13 = vmax.f32 %v459_v4, 0.0  ;;  %v511_v4 = vld [vmem:[%s3829_s3 + $0x78] sm:$0xff] }
 0x12b   :  { %v478_v11 = vmax.f32 %v458_v7, 0.0  ;;  %v2088_v12 = vpop.f32.mrb[4].mxu0 }
 0x12c   :  { %v3345_v14 = vadd.f32 %v2088_v12, %v3333_v2  ;;  %v3347_v15 = vpop.f32.mrb[5].mxu0  ;;  %v2710_v12 = vpack.c.bf16 %v1622_v6, %v1621_v5  ;;  %v1591_v5 = vld [vmem:[%s3829_s3 + $0x160] sm:$0xff]  ;;  %v1592_v6 = vld [vmem:[%s3829_s3 + $0x168] sm:$0xff] }
 0x12d   :  { %2145 = vmatprep.mubr.f32.mxu0 %v478_v11  ;;  %v2622_v11 = vpack.c.bf16 %v511_v4, %v510_v1  ;;  %v460_v26 = vadd.f32 %v3333_v2, %v3347_v15 }
 0x12e   :  { %2146 = vmatmul.mubr.f32.vlgmr.msra.gmra.mrb[24].mxu0 %v479_v13  ;;  %v1579_v13 = vld [vmem:[%s3829_s3 + $0x100] sm:$0xff] }
 0x12f   :  { %2597 = vmatpush3.bf16.msra.mxu0 %v2594_v53  ;;  %v2091_v20 = vpop.f32.mrb[6].mxu0  ;;  %2180 = vmatprep.mubr.f32.mxu0 %v476_v17  ;;  %v2702_v53 = vpack.c.bf16 %v1618_v48, %v1617_v47  ;;  %v480_v34 = vmax.f32 %v460_v26, 0.0  ;;  %v1586_v47 = vld [vmem:[%s3829_s3 + $0x138] sm:$0xff]  ;;  %v1629_v48 = vld [vmem:[%s3829_s3 + $0x290] sm:$0xff] }
 0x130   :  { %v463_v21 = vadd.f32 %v2091_v20, %v3333_v2  ;;  %v372_v22 = vpop.f32.mrb[7].mxu0  ;;  %2599 = vmatprep.subr.bf16.mxu0 %v2598_v16  ;;  %v1641_v26 = vld [vmem:[%s3829_s3 + $0x2f0] sm:$0xff] }
 0x131   :  { %v462_v25 = vadd.f32 %v3333_v2, %v372_v22  ;;  %v457_v22 = vadd.f32 %v3328_v0, %v3333_v2  ;;  %v1582_v0 = vld [vmem:[%s3829_s3 + $0x118] sm:$0xff] }
 0x132   :  { %v483_v30 = vmax.f32 %v463_v21, 0.0 }
 0x133   :  { %2601 = vmatpush3.bf16.msra.mxu0 %v2598_v16  ;;  %v3369_v29 = vpop.f32.mrb[8].mxu0  ;;  %v482_v9 = vmax.f32 %v462_v25, 0.0  ;;  %v1580_v16 = vld [vmem:[%s3829_s3 + $0x108] sm:$0xff]  ;;  %v2714_v25 = vpack.c.bf16 %v1624_v19, %v1623_v18  ;;  %v1637_v18 = vld [vmem:[%s3829_s3 + $0x2d0] sm:$0xff]  ;;  %v1638_v19 = vld [vmem:[%s3829_s3 + $0x2d8] sm:$0xff] }
 0x134   :  { %v382_v31 = vpop.f32.mrb[9].mxu0  ;;  %2603 = vmatprep.subr.bf16.mxu0 %v2602_v23  ;;  %v2626_v21 = vpack.c.bf16 %v1580_v16, %v1579_v13  ;;  %v1593_v13 = vld [vmem:[%s3829_s3 + $0x170] sm:$0xff]  ;;  %v1594_v16 = vld [vmem:[%s3829_s3 + $0x178] sm:$0xff] }
 0x135   :  { %v464_v35 = vadd.f32 %v3333_v2, %v382_v31  ;;  %2250 = vmatprep.mubr.f32.mxu1 %v482_v9  ;;  %v1625_v9 = vld [vmem:[%s3829_s3 + $0x270] sm:$0xff]  ;;  %v477_v31 = vmax.f32 %v457_v22, 0.0  ;;  %v1639_v22 = vld [vmem:[%s3829_s3 + $0x2e0] sm:$0xff] }
 0x136   :  { %2251 = vmatmul.mubr.f32.vlgmr.msra.gmra.mrb[0].mxu1 %v483_v30  ;;  %v1626_v30 = vld [vmem:[%s3829_s3 + $0x278] sm:$0xff] }
 0x137   :  { %v484_v39 = vmax.f32 %v464_v35, 0.0  ;;  %2605 = vmatpush3.bf16.msra.mxu0 %v2602_v23  ;;  %2693 = vmatpush3.bf16.msra.mxu1 %v2690_v61  ;;  %v2097_v40 = vpop.f32.mrb[10].mxu0  ;;  %v2718_v35 = vpack.c.bf16 %v1626_v30, %v1625_v9  ;;  %v1643_v30 = vld [vmem:[%s3829_s3 + $0x300] sm:$0xff] }
 0x138   :  { %v3385_v41 = vadd.f32 %v2097_v40, %v3333_v2  ;;  %v3387_v42 = vpop.f32.mrb[11].mxu0  ;;  %2607 = vmatprep.subr.bf16.mxu0 %v2606_v32  ;;  %2695 = vmatprep.subr.bf16.mxu1 %v2694_v33  ;;  %v2634_v40 = vpack.c.bf16 %v1584_v37, %v1583_v36  ;;  %v1647_v36 = vld [vmem:[%s3829_s3 + $0x320] sm:$0xff]  ;;  %v1648_v37 = vld [vmem:[%s3829_s3 + $0x328] sm:$0xff] }
 0x139   :  { %2285 = vmatprep.mubr.f32.mxu1 %v484_v39  ;;  %v1628_v39 = vld [vmem:[%s3829_s3 + $0x288] sm:$0xff]  ;;  %v466_v46 = vadd.f32 %v3333_v2, %v3387_v42 }
 0x13a   :  { %v1588_v42 = vld [vmem:[%s3829_s3 + $0x148] sm:$0xff] }
 0x13b   :  { %2609 = vmatpush3.bf16.msra.mxu0 %v2606_v32  ;;  %2697 = vmatpush3.bf16.msra.mxu1 %v2694_v33  ;;  %v2100_v49 = vpop.f32.mrb[12].mxu0  ;;  %v2630_v32 = vpack.c.bf16 %v1582_v0, %v1581_v28  ;;  %v1642_v28 = vld [vmem:[%s3829_s3 + $0x2f8] sm:$0xff]  ;;  %v481_v0 = vmax.f32 %v3345_v14, 0.0 }
 0x13c   :  { %v3402_v50 = vadd.f32 %v2100_v49, %v3333_v2  ;;  %v402_v51 = vpop.f32.mrb[13].mxu0  ;;  %2611 = vmatprep.subr.bf16.mxu0 %v2610_v43  ;;  %2699 = vmatprep.subr.bf16.mxu1 %v2698_v44  ;;  %v2750_v9 = vpack.c.bf16 %v1642_v28, %v1641_v26  ;;  %v1646_v14 = vld [vmem:[%s3829_s3 + $0x318] sm:$0xff]  ;;  %v1677_v26 = vld [vmem:[%s3829_s3 + $0x410] sm:$0xff] }
 0x13d   :  { %v3408_v55 = vadd.f32 %v3333_v2, %v402_v51  ;;  %v2638_v51 = vpack.c.bf16 %v1586_v47, %v1585_v45  ;;  %v1653_v45 = vld [vmem:[%s3829_s3 + $0x350] sm:$0xff]  ;;  %v1678_v28 = vld [vmem:[%s3829_s3 + $0x418] sm:$0xff] }
 0x13f   :  { %2613 = vmatpush3.bf16.msra.mxu0 %v2610_v43  ;;  %2701 = vmatpush3.bf16.msra.mxu1 %v2698_v44  ;;  %v2103_v59 = vpop.f32.mrb[14].mxu0  ;;  %v465_v43 = vadd.f32 %v3369_v29, %v3333_v2  ;;  %v2722_v44 = vpack.c.bf16 %v1628_v39, %v1627_v38  ;;  %v1630_v29 = vld [vmem:[%s3829_s3 + $0x298] sm:$0xff]  ;;  %v2762_v38 = vpack.c.bf16 %v1648_v37, %v1647_v36  ;;  %v1685_v36 = vld [vmem:[%s3829_s3 + $0x450] sm:$0xff] }
 0x140   :  { %v3420_v60 = vadd.f32 %v2103_v59, %v3333_v2  ;;  %v412_v61 = vpop.f32.mrb[15].mxu0  ;;  %2615 = vmatprep.subr.bf16.mxu0 %v2614_v52  ;;  %2703 = vmatprep.subr.bf16.mxu1 %v2702_v53  ;;  %v1589_v59 = vld [vmem:[%s3829_s3 + $0x150] sm:$0xff]  ;;  %v1686_v37 = vld [vmem:[%s3829_s3 + $0x458] sm:$0xff] }
 0x141   :  { %v3426_v3 = vadd.f32 %v3333_v2, %v412_v61  ;;  %v485_v49 = vmax.f32 %v465_v43, 0.0  ;;  %v1590_v61 = vld [vmem:[%s3829_s3 + $0x158] sm:$0xff]  ;;  %v1652_v43 = vld [vmem:[%s3829_s3 + $0x348] sm:$0xff] }
 0x142   :  { %v2646_v1 = vpack.c.bf16 %v1590_v61, %v1589_v59 }
 0x143   :  { %2617 = vmatpush3.bf16.msra.mxu0 %v2614_v52  ;;  %2705 = vmatpush3.bf16.msra.mxu1 %v2702_v53  ;;  %v2106_v7 = vpop.f32.mrb[16].mxu0  ;;  %v2726_v52 = vpack.c.bf16 %v1630_v29, %v1629_v48  ;;  %v486_v53 = vmax.f32 %v466_v46, 0.0  ;;  %v1654_v46 = vld [vmem:[%s3829_s3 + $0x358] sm:$0xff]  ;;  %v1655_v48 = vld [vmem:[%s3829_s3 + $0x360] sm:$0xff]  ;;  %v1656_v29 = vld [vmem:[%s3829_s3 + $0x368] sm:$0xff]  ;;  %v490_v61 = vmax.f32 %v3426_v3, 0.0 }
 0x144   :  { %v3438_v8 = vadd.f32 %v2106_v7, %v3333_v2  ;;  %v422_v10 = vpop.f32.mrb[17].mxu0  ;;  %2619 = vmatprep.subr.bf16.mxu0 %v2618_v62  ;;  %2707 = vmatprep.subr.bf16.mxu1 %v2706_v63  ;;  %v1635_v7 = vld [vmem:[%s3829_s3 + $0x2c0] sm:$0xff]  ;;  %v2774_v47 = vpack.c.bf16 %v1654_v46, %v1653_v45  ;;  %v1666_v3 = vld [vmem:[%s3829_s3 + $0x3b8] sm:$0xff]  ;;  %v1447_v46 = vld [vmem:[%s3831_s5 + $0x28] sm:$0xff] }
 0x145   :  { %v3447_v17 = vadd.f32 %v3333_v2, %v422_v10  ;;  %v1636_v10 = vld [vmem:[%s3829_s3 + $0x2c8] sm:$0xff]  ;;  %v1446_v45 = vld [vmem:[%s3831_s5 + $0x20] sm:$0xff] }
 0x147   :  { %2621 = vmatpush3.bf16.msra.mxu0 %v2618_v62  ;;  %2709 = vmatpush3.bf16.msra.mxu1 %v2706_v63  ;;  %v2109_v20 = vpop.f32.mrb[18].mxu0  ;;  %v1633_v62 = vld [vmem:[%s3829_s3 + $0x2b0] sm:$0xff]  ;;  %v1634_v63 = vld [vmem:[%s3829_s3 + $0x2b8] sm:$0xff] }
 0x148   :  { %v3458_v23 = vadd.f32 %v2109_v20, %v3333_v2  ;;  %v432_v24 = vpop.f32.mrb[19].mxu0  ;;  %2623 = vmatprep.subr.bf16.mxu0 %v2622_v11  ;;  %2711 = vmatprep.subr.bf16.mxu1 %v2710_v12  ;;  %v2734_v4 = vpack.c.bf16 %v1634_v63, %v1633_v62  ;;  %v2654_v20 = vpack.c.bf16 %v1594_v16, %v1593_v13  ;;  %v1663_v62 = vld [vmem:[%s3829_s3 + $0x3a0] sm:$0xff]  ;;  %v1664_v63 = vld [vmem:[%s3829_s3 + $0x3a8] sm:$0xff] }
 0x149   :  { %v3463_v27 = vadd.f32 %v3333_v2, %v432_v24  ;;  %v1587_v2 = vld [vmem:[%s3829_s3 + $0x140] sm:$0xff]  ;;  %v1640_v24 = vld [vmem:[%s3829_s3 + $0x2e8] sm:$0xff] }
 0x14a   :  { %v2642_v57 = vpack.c.bf16 %v1588_v42, %v1587_v2  ;;  %v1659_v42 = vld [vmem:[%s3829_s3 + $0x380] sm:$0xff]  ;;  %v1672_v16 = vld [vmem:[%s3829_s3 + $0x3e8] sm:$0xff] }
 0x14b   :  { %2625 = vmatpush3.bf16.msra.mxu0 %v2622_v11  ;;  %2713 = vmatpush3.bf16.msra.mxu1 %v2710_v12  ;;  %v2112_v15 = vpop.f32.mrb[22].mxu0  ;;  %v2650_v11 = vpack.c.bf16 %v1592_v6, %v1591_v5  ;;  %v2738_v12 = vpack.c.bf16 %v1636_v10, %v1635_v7  ;;  %v1667_v5 = vld [vmem:[%s3829_s3 + $0x3c0] sm:$0xff]  ;;  %v1668_v6 = vld [vmem:[%s3829_s3 + $0x3c8] sm:$0xff]  ;;  %v1669_v10 = vld [vmem:[%s3829_s3 + $0x3d0] sm:$0xff] }
 0x14c   :  { %2627 = vmatprep.subr.bf16.mxu0 %v2626_v21  ;;  %2715 = vmatprep.subr.bf16.mxu1 %v2714_v25  ;;  %v442_v33 = vpop.f32.mrb[23].mxu0  ;;  %v1644_v15 = vld [vmem:[%s3829_s3 + $0x308] sm:$0xff]  ;;  %v2802_v7 = vpack.c.bf16 %v1668_v6, %v1667_v5  ;;  %v1671_v13 = vld [vmem:[%s3829_s3 + $0x3e0] sm:$0xff] }
 0x14d   :  { %v487_v33 = vmax.f32 %v3385_v41, 0.0  ;;  %v1649_v41 = vld [vmem:[%s3829_s3 + $0x330] sm:$0xff] }
 0x14e   :  { %2181 = vmatmul.mubr.f32.vlgmr.msra.gmra.mrb[24].mxu0 %v477_v31  ;;  %v2754_v31 = vpack.c.bf16 %v1644_v15, %v1643_v30  ;;  %v492_v30 = vmax.f32 %v3447_v17, 0.0  ;;  %v1679_v15 = vld [vmem:[%s3829_s3 + $0x420] sm:$0xff]  ;;  %v1682_v17 = vld [vmem:[%s3829_s3 + $0x438] sm:$0xff] }
 0x14f   :  { %2629 = vmatpush3.bf16.msra.mxu0 %v2626_v21  ;;  %2215 = vmatprep.mubr.f32.mxu0 %v480_v34  ;;  %v2742_v21 = vpack.c.bf16 %v1638_v19, %v1637_v18  ;;  %v2810_v18 = vpack.c.bf16 %v1672_v16, %v1671_v13  ;;  %v1673_v19 = vld [vmem:[%s3829_s3 + $0x3f0] sm:$0xff]  ;;  %v1699_v16 = vld [vmem:[%s3829_s3 + $0x4c0] sm:$0xff] }
 0x150   :  { %2717 = vmatpush3.bf16.msra.mxu1 %v2714_v25  ;;  %2631 = vmatprep.subr.bf16.mxu0 %v2630_v32  ;;  %v2746_v25 = vpack.c.bf16 %v1640_v24, %v1639_v22  ;;  %v1675_v22 = vld [vmem:[%s3829_s3 + $0x400] sm:$0xff]  ;;  %v1676_v24 = vld [vmem:[%s3829_s3 + $0x408] sm:$0xff] }
 0x151   :  { %2719 = vmatprep.subr.bf16.mxu1 %v2718_v35 }
 0x153   :  { %2633 = vmatpush3.bf16.msra.mxu0 %v2630_v32  ;;  %v1645_v32 = vld [vmem:[%s3829_s3 + $0x310] sm:$0xff] }
 0x154   :  { %2721 = vmatpush3.bf16.msra.mxu1 %v2718_v35  ;;  %2635 = vmatprep.subr.bf16.mxu0 %v2634_v40  ;;  %v2758_v34 = vpack.c.bf16 %v1646_v14, %v1645_v32  ;;  %v488_v35 = vmax.f32 %v3408_v55, 0.0  ;;  %v1650_v55 = vld [vmem:[%s3829_s3 + $0x338] sm:$0xff] }
 0x155   :  { %2723 = vmatprep.subr.bf16.mxu1 %v2722_v44  ;;  %v2766_v39 = vpack.c.bf16 %v1650_v55, %v1649_v41  ;;  %v1443_v41 = vld [vmem:[%s3831_s5 + $0x8] sm:$0xff]  ;;  %v1444_v55 = vld [vmem:[%s3831_s5 + $0x10] sm:$0xff] }
 0x157   :  { %2286 = vmatmul.mubr.f32.vlgmr.msra.gmra.mrb[0].mxu1 %v485_v49  ;;  %2637 = vmatpush3.bf16.msra.mxu0 %v2634_v40  ;;  %v1651_v40 = vld [vmem:[%s3829_s3 + $0x340] sm:$0xff]  ;;  %v2778_v49 = vpack.c.bf16 %v1656_v29, %v1655_v48  ;;  %v1688_v48 = vld [vmem:[%s3829_s3 + $0x468] sm:$0xff]  ;;  %v2890_v29 = vpack.c.bf16 %v1447_v46, %v1446_v45 }
 0x158   :  { %2725 = vmatpush3.bf16.msra.mxu1 %v2722_v44  ;;  %2320 = vmatprep.mubr.f32.mxu1 %v486_v53  ;;  %v2770_v44 = vpack.c.bf16 %v1652_v43, %v1651_v40  ;;  %v1660_v53 = vld [vmem:[%s3829_s3 + $0x388] sm:$0xff]  ;;  %v1445_v40 = vld [vmem:[%s3831_s5 + $0x18] sm:$0xff]  ;;  %v2838_v43 = vpack.c.bf16 %v1686_v37, %v1685_v36 }
 0x159   :  { %2639 = vmatprep.subr.bf16.mxu0 %v2638_v51  ;;  %2727 = vmatprep.subr.bf16.mxu1 %v2726_v52  ;;  %v2786_v54 = vpack.c.bf16 %v1660_v53, %v1659_v42  ;;  %v1690_v42 = vld [vmem:[%s3829_s3 + $0x478] sm:$0xff] }
 0x15b   :  { %2641 = vmatpush3.bf16.msra.mxu0 %v2638_v51  ;;  %v1657_v51 = vld [vmem:[%s3829_s3 + $0x370] sm:$0xff] }
 0x15c   :  { %2729 = vmatpush3.bf16.msra.mxu1 %v2726_v52  ;;  %2643 = vmatprep.subr.bf16.mxu0 %v2642_v57  ;;  %v1658_v52 = vld [vmem:[%s3829_s3 + $0x378] sm:$0xff] }
 0x15d   :  { %2731 = vmatprep.subr.bf16.mxu1 %v2730_v58  ;;  %v2782_v2 = vpack.c.bf16 %v1658_v52, %v1657_v51  ;;  %v1448_v51 = vld [vmem:[%s3831_s5 + $0x30] sm:$0xff]  ;;  %v1449_v52 = vld [vmem:[%s3831_s5 + $0x38] sm:$0xff] }
 0x15e   :  { %v2894_v53 = vpack.c.bf16 %v1449_v52, %v1448_v51 }
 0x15f   :  { %2645 = vmatpush3.bf16.msra.mxu0 %v2642_v57  ;;  %v1662_v57 = vld [vmem:[%s3829_s3 + $0x398] sm:$0xff] }
 0x160   :  { %2733 = vmatpush3.bf16.msra.mxu1 %v2730_v58  ;;  %2647 = vmatprep.subr.bf16.mxu0 %v2646_v1  ;;  %v489_v58 = vmax.f32 %v3402_v50, 0.0  ;;  %v2790_v59 = vpack.c.bf16 %v1662_v57, %v1661_v56  ;;  %v1665_v50 = vld [vmem:[%s3829_s3 + $0x3b0] sm:$0xff]  ;;  %v1450_v56 = vld [vmem:[%s3831_s5 + $0x40] sm:$0xff]  ;;  %v1451_v57 = vld [vmem:[%s3831_s5 + $0x48] sm:$0xff] }
 0x161   :  { %2735 = vmatprep.subr.bf16.mxu1 %v2734_v4 }
 0x163   :  { %2649 = vmatpush3.bf16.msra.mxu0 %v2646_v1  ;;  %v2794_v1 = vpack.c.bf16 %v1664_v63, %v1663_v62  ;;  %v1693_v63 = vld [vmem:[%s3829_s3 + $0x490] sm:$0xff] }
 0x164   :  { %2737 = vmatpush3.bf16.msra.mxu1 %v2734_v4  ;;  %2651 = vmatprep.subr.bf16.mxu0 %v2650_v11  ;;  %v2798_v4 = vpack.c.bf16 %v1666_v3, %v1665_v50  ;;  %v1452_v50 = vld [vmem:[%s3831_s5 + $0x50] sm:$0xff]  ;;  %v1453_v3 = vld [vmem:[%s3831_s5 + $0x58] sm:$0xff] }
 0x165   :  { %2739 = vmatprep.subr.bf16.mxu1 %v2738_v12  ;;  %v2902_v6 = vpack.c.bf16 %v1453_v3, %v1452_v50 }
 0x167   :  { %2653 = vmatpush3.bf16.msra.mxu0 %v2650_v11  ;;  %v1670_v11 = vld [vmem:[%s3829_s3 + $0x3d8] sm:$0xff] }
 0x168   :  { %2741 = vmatpush3.bf16.msra.mxu1 %v2738_v12  ;;  %2655 = vmatprep.subr.bf16.mxu0 %v2654_v20  ;;  %v2806_v12 = vpack.c.bf16 %v1670_v11, %v1669_v10  ;;  %v1695_v10 = vld [vmem:[%s3829_s3 + $0x4a0] sm:$0xff]  ;;  %v1696_v11 = vld [vmem:[%s3829_s3 + $0x4a8] sm:$0xff] }
 0x169   :  { %2743 = vmatprep.subr.bf16.mxu1 %v2742_v21 }
 0x16b   :  { %2657 = vmatpush3.bf16.msra.mxu0 %v2654_v20  ;;  %v1674_v20 = vld [vmem:[%s3829_s3 + $0x3f8] sm:$0xff] }
 0x16c   :  { %2745 = vmatpush3.bf16.msra.mxu1 %v2742_v21  ;;  %v2814_v21 = vpack.c.bf16 %v1674_v20, %v1673_v19  ;;  %v1701_v20 = vld [vmem:[%s3829_s3 + $0x4d0] sm:$0xff] }
 0x16d   :  { %2747 = vmatprep.subr.bf16.mxu1 %v2746_v25 }
 0x16e   :  { %2216 = vmatmul.mubr.f32.vlgmr.msra.gmra.mrb[24].mxu0 %v481_v0  ;;  %v491_v0 = vmax.f32 %v3420_v60, 0.0  ;;  %v1681_v60 = vld [vmem:[%s3829_s3 + $0x430] sm:$0xff] }
 0x16f   :  { %v2830_v14 = vpack.c.bf16 %v1682_v17, %v1681_v60  ;;  %v1455_v60 = vld [vmem:[%s3831_s5 + $0x68] sm:$0xff] }
 0x170   :  { %2749 = vmatpush3.bf16.msra.mxu1 %v2746_v25  ;;  %v2818_v25 = vpack.c.bf16 %v1676_v24, %v1675_v22  ;;  %v1703_v24 = vld [vmem:[%s3829_s3 + $0x4e0] sm:$0xff] }
 0x171   :  { %2751 = vmatprep.subr.bf16.mxu1 %v2750_v9 }
 0x174   :  { %2753 = vmatpush3.bf16.msra.mxu1 %v2750_v9  ;;  %v2822_v9 = vpack.c.bf16 %v1678_v28, %v1677_v26  ;;  %v1705_v28 = vld [vmem:[%s3829_s3 + $0x4f0] sm:$0xff] }
 0x175   :  { %2755 = vmatprep.subr.bf16.mxu1 %v2754_v31 }
 0x177   :  { %2321 = vmatmul.mubr.f32.vlgmr.msra.gmra.mrb[0].mxu1 %v487_v33  ;;  %v1683_v33 = vld [vmem:[%s3829_s3 + $0x440] sm:$0xff] }
 0x178   :  { %2757 = vmatpush3.bf16.msra.mxu1 %v2754_v31  ;;  %2355 = vmatprep.mubr.f32.mxu1 %v488_v35  ;;  %v1680_v31 = vld [vmem:[%s3829_s3 + $0x428] sm:$0xff] }
 0x179   :  { %2759 = vmatprep.subr.bf16.mxu1 %v2758_v34  ;;  %v2826_v32 = vpack.c.bf16 %v1680_v31, %v1679_v15 }
 0x17c   :  { %2761 = vmatpush3.bf16.msra.mxu1 %v2758_v34  ;;  %v1684_v34 = vld [vmem:[%s3829_s3 + $0x448] sm:$0xff] }
 0x17d   :  { %2763 = vmatprep.subr.bf16.mxu1 %v2762_v38  ;;  %v2834_v35 = vpack.c.bf16 %v1684_v34, %v1683_v33 }
 0x180   :  { %2765 = vmatpush3.bf16.msra.mxu1 %v2762_v38  ;;  %v1442_v38 = vld [vmem:[%s3831_s5] sm:$0xff] }
 0x181   :  { %2767 = vmatprep.subr.bf16.mxu1 %v2766_v39 }
 0x184   :  { %2769 = vmatpush3.bf16.msra.mxu1 %v2766_v39  ;;  %v2882_v39 = vpack.c.bf16 %v1443_v41, %v1442_v38 }
 0x185   :  { %2771 = vmatprep.subr.bf16.mxu1 %v2770_v44 }
 0x186   :  { %2883 = vmatprep.subr.bf16.mxu0 %v2882_v39 }
 0x187   :  { %2885 = vmatpush3.bf16.msra.mxu0 %v2882_v39 }
 0x188   :  { %2773 = vmatpush3.bf16.msra.mxu1 %v2770_v44  ;;  %v2886_v44 = vpack.c.bf16 %v1445_v40, %v1444_v55 }
 0x189   :  { %2775 = vmatprep.subr.bf16.mxu1 %v2774_v47 }
 0x18a   :  { %2887 = vmatprep.subr.bf16.mxu0 %v2886_v44 }
 0x18b   :  { %2889 = vmatpush3.bf16.msra.mxu0 %v2886_v44 }
 0x18c   :  { %2777 = vmatpush3.bf16.msra.mxu1 %v2774_v47  ;;  %v1687_v47 = vld [vmem:[%s3829_s3 + $0x460] sm:$0xff]  ;;  %2891 = vmatprep.subr.bf16.mxu0 %v2890_v29 }
 0x18d   :  { %2779 = vmatprep.subr.bf16.mxu1 %v2778_v49 }
 0x18f   :  { %2893 = vmatpush3.bf16.msra.mxu0 %v2890_v29 }
 0x190   :  { %2781 = vmatpush3.bf16.msra.mxu1 %v2778_v49  ;;  %v2842_v49 = vpack.c.bf16 %v1688_v48, %v1687_v47  ;;  %2895 = vmatprep.subr.bf16.mxu0 %v2894_v53 }
 0x191   :  { %2783 = vmatprep.subr.bf16.mxu1 %v2782_v2 }
 0x193   :  { %2897 = vmatpush3.bf16.msra.mxu0 %v2894_v53 }
 0x194   :  { %2785 = vmatpush3.bf16.msra.mxu1 %v2782_v2  ;;  %v1689_v2 = vld [vmem:[%s3829_s3 + $0x470] sm:$0xff] }
 0x195   :  { %2787 = vmatprep.subr.bf16.mxu1 %v2786_v54 }
 0x197   :  { %2356 = vmatmul.mubr.f32.vlgmr.msra.gmra.mrb[0].mxu1 %v489_v58  ;;  %v1691_v58 = vld [vmem:[%s3829_s3 + $0x480] sm:$0xff] }
 0x198   :  { %2789 = vmatpush3.bf16.msra.mxu1 %v2786_v54  ;;  %2390 = vmatprep.mubr.f32.mxu1 %v490_v61  ;;  %v2846_v54 = vpack.c.bf16 %v1690_v42, %v1689_v2  ;;  %v2898_v61 = vpack.c.bf16 %v1451_v57, %v1450_v56 }
 0x199   :  { %2791 = vmatprep.subr.bf16.mxu1 %v2790_v59 }
 0x19a   :  { %2899 = vmatprep.subr.bf16.mxu0 %v2898_v61 }
 0x19b   :  { %2901 = vmatpush3.bf16.msra.mxu0 %v2898_v61 }
 0x19c   :  { %2793 = vmatpush3.bf16.msra.mxu1 %v2790_v59  ;;  %v1692_v59 = vld [vmem:[%s3829_s3 + $0x488] sm:$0xff]  ;;  %2903 = vmatprep.subr.bf16.mxu0 %v2902_v6 }
 0x19d   :  { %2795 = vmatprep.subr.bf16.mxu1 %v2794_v1  ;;  %v2850_v62 = vpack.c.bf16 %v1692_v59, %v1691_v58 }
 0x19f   :  { %2905 = vmatpush3.bf16.msra.mxu0 %v2902_v6 }
 0x1a0   :  { %2797 = vmatpush3.bf16.msra.mxu1 %v2794_v1  ;;  %v1694_v1 = vld [vmem:[%s3829_s3 + $0x498] sm:$0xff] }
 0x1a1   :  { %2799 = vmatprep.subr.bf16.mxu1 %v2798_v4  ;;  %v2854_v5 = vpack.c.bf16 %v1694_v1, %v1693_v63 }
 0x1a4   :  { %2801 = vmatpush3.bf16.msra.mxu1 %v2798_v4  ;;  %v493_v4 = vmax.f32 %v3438_v8, 0.0  ;;  %v1697_v8 = vld [vmem:[%s3829_s3 + $0x4b0] sm:$0xff] }
 0x1a5   :  { %2803 = vmatprep.subr.bf16.mxu1 %v2802_v7 }
 0x1a8   :  { %2805 = vmatpush3.bf16.msra.mxu1 %v2802_v7  ;;  %v494_v7 = vmax.f32 %v3463_v27, 0.0  ;;  %v1698_v27 = vld [vmem:[%s3829_s3 + $0x4b8] sm:$0xff] }
 0x1a9   :  { %2807 = vmatprep.subr.bf16.mxu1 %v2806_v12  ;;  %v2862_v13 = vpack.c.bf16 %v1698_v27, %v1697_v8 }
 0x1ac   :  { %2809 = vmatpush3.bf16.msra.mxu1 %v2806_v12  ;;  %v2858_v12 = vpack.c.bf16 %v1696_v11, %v1695_v10 }
 0x1ad   :  { %2811 = vmatprep.subr.bf16.mxu1 %v2810_v18 }
 0x1b0   :  { %2813 = vmatpush3.bf16.msra.mxu1 %v2810_v18  ;;  %v1700_v18 = vld [vmem:[%s3829_s3 + $0x4c8] sm:$0xff] }
 0x1b1   :  { %2815 = vmatprep.subr.bf16.mxu1 %v2814_v21  ;;  %v2866_v19 = vpack.c.bf16 %v1700_v18, %v1699_v16 }
 0x1b4   :  { %2817 = vmatpush3.bf16.msra.mxu1 %v2814_v21  ;;  %v1702_v21 = vld [vmem:[%s3829_s3 + $0x4d8] sm:$0xff] }
 0x1b5   :  { %2819 = vmatprep.subr.bf16.mxu1 %v2818_v25  ;;  %v2870_v22 = vpack.c.bf16 %v1702_v21, %v1701_v20 }
 0x1b7   :  { %2391 = vmatmul.mubr.f32.vlgmr.msra.gmra.mrb[0].mxu1 %v491_v0  ;;  %v1706_v0 = vld [vmem:[%s3829_s3 + $0x4f8] sm:$0xff] }
 0x1b8   :  { %2821 = vmatpush3.bf16.msra.mxu1 %v2818_v25  ;;  %2425 = vmatprep.mubr.f32.mxu1 %v492_v30  ;;  %v1704_v25 = vld [vmem:[%s3829_s3 + $0x4e8] sm:$0xff]  ;;  %v495_v30 = vmax.f32 %v3458_v23, 0.0  ;;  %v1457_v23 = vld [vmem:[%s3831_s5 + $0x78] sm:$0xff] }
 0x1b9   :  { %2823 = vmatprep.subr.bf16.mxu1 %v2822_v9  ;;  %v2874_v26 = vpack.c.bf16 %v1704_v25, %v1703_v24 }
 0x1bc   :  { %2825 = vmatpush3.bf16.msra.mxu1 %v2822_v9  ;;  %v2878_v9 = vpack.c.bf16 %v1706_v0, %v1705_v28 }
 0x1bd   :  { %2827 = vmatprep.subr.bf16.mxu1 %v2826_v32 }
 0x1c0   :  { %2829 = vmatpush3.bf16.msra.mxu1 %v2826_v32  ;;  %v1454_v32 = vld [vmem:[%s3831_s5 + $0x60] sm:$0xff] }
 0x1c1   :  { %2831 = vmatprep.subr.bf16.mxu1 %v2830_v14  ;;  %v2906_v17 = vpack.c.bf16 %v1455_v60, %v1454_v32 }
 0x1c3   :  { %2907 = vmatprep.subr.bf16.mxu0 %v2906_v17 }
 0x1c4   :  { %2833 = vmatpush3.bf16.msra.mxu1 %v2830_v14  ;;  %2909 = vmatpush3.bf16.msra.mxu0 %v2906_v17  ;;  %v1456_v14 = vld [vmem:[%s3831_s5 + $0x70] sm:$0xff] }
 0x1c5   :  { %2835 = vmatprep.subr.bf16.mxu1 %v2834_v35  ;;  %v2910_v33 = vpack.c.bf16 %v1457_v23, %v1456_v14 }
 0x1c7   :  { %2911 = vmatprep.subr.bf16.mxu0 %v2910_v33 }
 0x1c8   :  { %2837 = vmatpush3.bf16.msra.mxu1 %v2834_v35  ;;  %2913 = vmatpush3.bf16.msra.mxu0 %v2910_v33  ;;  %v1707_v35 = vld [vmem:[%s3832_s4] ss:$0 sm:$0xff] }
 0x1c9   :  { %2839 = vmatprep.subr.bf16.mxu1 %v2838_v43 }
 0x1cc   :  { %2841 = vmatpush3.bf16.msra.mxu1 %v2838_v43  ;;  %v1708_v43 = vld [vmem:[%s3833_s6] ss:$0 sm:$0xff] }
 0x1cd   :  { %2843 = vmatprep.subr.bf16.mxu1 %v2842_v49 }
 0x1d0   :  { %2845 = vmatpush3.bf16.msra.mxu1 %v2842_v49 }
 0x1d1   :  { %2847 = vmatprep.subr.bf16.mxu1 %v2846_v54 }
 0x1d4   :  { %2849 = vmatpush3.bf16.msra.mxu1 %v2846_v54 }
 0x1d5   :  { %2851 = vmatprep.subr.bf16.mxu1 %v2850_v62 }
 0x1d7   :  { %2426 = vmatmul.mubr.f32.vlgmr.msra.gmra.mrb[0].mxu1 %v493_v4 }
 0x1d8   :  { %2853 = vmatpush3.bf16.msra.mxu1 %v2850_v62  ;;  %2460 = vmatprep.mubr.f32.mxu1 %v494_v7 }
 0x1d9   :  { %2855 = vmatprep.subr.bf16.mxu1 %v2854_v5 }
 0x1dc   :  { %2857 = vmatpush3.bf16.msra.mxu1 %v2854_v5 }
 0x1dd   :  { %2859 = vmatprep.subr.bf16.mxu1 %v2858_v12 }
 0x1e0   :  { %2861 = vmatpush3.bf16.msra.mxu1 %v2858_v12 }
 0x1e1   :  { %2863 = vmatprep.subr.bf16.mxu1 %v2862_v13 }
 0x1e4   :  { %2865 = vmatpush3.bf16.msra.mxu1 %v2862_v13 }
 0x1e5   :  { %2867 = vmatprep.subr.bf16.mxu1 %v2866_v19 }
 0x1e8   :  { %2869 = vmatpush3.bf16.msra.mxu1 %v2866_v19 }
 0x1e9   :  { %2871 = vmatprep.subr.bf16.mxu1 %v2870_v22 }
 0x1ec   :  { %2873 = vmatpush3.bf16.msra.mxu1 %v2870_v22 }
 0x1ed   :  { %2875 = vmatprep.subr.bf16.mxu1 %v2874_v26 }
 0x1f0   :  { %2877 = vmatpush3.bf16.msra.mxu1 %v2874_v26 }
 0x1f1   :  { %2879 = vmatprep.subr.bf16.mxu1 %v2878_v9 }
 0x1f4   :  { %2881 = vmatpush3.bf16.msra.mxu1 %v2878_v9 }
 0x1f7   :  { %2461 = vmatmul.mubr.f32.vlgmr.msra.gmra.mrb[0].mxu1 %v495_v30 }
 0x241   :  { %v2217_v15 = vpop.f32.mrb[24].mxu0 }
 0x242   :  { %v762_v31 = vpop.f32.mrb[25].mxu0 }
 0x2ca   :  { %v2462_v34 = vpop.f32.mrb[0].mxu1 }
 0x2cb   :  { %v2914_v36 = vadd.f32 %v2462_v34, %v2217_v15  ;;  %v1420_v37 = vpop.f32.mrb[1].mxu1 }
 0x2cc   :  { %v2915_v38 = vadd.f32 %v1420_v37, %v762_v31 }
 0x2cd   :  { %v1439_v41 = vadd.f32 %v2914_v36, %v1707_v35 }
 0x2ce   :  { %v1438_v55 = vadd.f32 %v2915_v38, %v1707_v35 }
 0x2cf   :  { %v1441_v40 = vmax.f32 %v1439_v41, 0.0 }
 0x2d0   :  { %v1440_v39 = vmax.f32 %v1438_v55, 0.0 }
 0x2d2   :  { %2495 = vmatprep.mubr.f32.mxu0 %v1440_v39 }
 0x2d3   :  { %2496 = vmatmul.mubr.f32.vlgmr.msra.gmra.mrb[26].mxu0 %v1441_v40 }
 0x3a6   :  { %v2497_v44 = vpop.f32.mrb[26].mxu0 }
 0x3a7   :  { %v1537_v45 = vadd.f32 %v2497_v44, %v1708_v43  ;;  %v1531_v46 = vpop.f32.mrb[27].mxu0 }
 0x3a8   :  { %v1532_v47 = vadd.f32 %v1708_v43, %v1531_v46 }
 0x3a9   :  { %1541 = vst [vmem:[%s3834_s7 + $0x8] sm:$0xff] %v1537_v45 }
 0x3aa   :  { %1540 = vst [vmem:[%s3834_s7] sm:$0xff] %v1532_v47 }

</bundles_post_ra>
